<compile_context>
chip_gen: v6e
topology: v6e:2x2x1
jax: 0.10.0
libtpu: 0.0.40
codegen_flags: <defaults>
</compile_context>

<pallas_src>
import math

import jax
import jax.numpy as jnp
from jax.experimental import pallas as pl
from jax.experimental.pallas import tpu as pltpu


# ---------------------------------------------------------------------------
# Fused kernel
# ---------------------------------------------------------------------------

def _sigmoid(z):
    # Explicit sigmoid (exp goes to the EUP).
    return 1.0 / (1.0 + jnp.exp(-z))


def _lenet5_kernel(
    x_ref,      # (1, 1, 28, 28)   one input image
    w1b_ref,    # (5, 28, 168)     conv1 banded weights  [ky][c, co*28+ox]
    b1_ref,     # (1, 168)
    pw1_ref,    # (168, 84)        block-diag 2x2 avg pool (W axis) after C1
    ph1_ref,    # (14, 28)         2x2 avg pool (H axis) after C1
    w3b_ref,    # (5, 84, 160)     conv3 banded weights  [ky][ci*14+c, co*10+ox]
    b3_ref,     # (1, 160)
    pw3_ref,    # (160, 80)        block-diag 2x2 avg pool (W axis) after C3
    ph3_ref,    # (5, 10)          2x2 avg pool (H axis) after C3
    w5m_ref,    # (5, 80, 120)     conv5 weights  [ky][ci*5+kx, co]
    b5_ref,     # (1, 120)
    w6t_ref,    # (120, 84)
    b6_ref,     # (1, 84)
    wot_ref,    # (84, 10)
    bo_ref,     # (1, 10)
    out_ref,    # (1, 1, 10)
    xpad_ref,   # VMEM scratch (32, 28): vertically zero-padded image
    s2_ref,     # VMEM scratch (14, 84): pooled C1 activations [y, ci*14+x]
    s4_ref,     # VMEM scratch (5, 80):  pooled C3 activations [y, ci*5+x]
):
    f32 = jnp.float32

    # ---- stage 0: vertically zero-padded input ----------------------------
    # (horizontal zero padding is already folded into the w1 band matrices)
    xpad_ref[...] = jnp.zeros((32, 28), f32)
    xpad_ref[2:30, :] = x_ref[0, 0]

    # ---- C1 (1->6, 5x5, pad=2) + sigmoid + S2 (2x2 avg pool) --------------
    # One banded matmul per kernel row; all 6 output channels share the lanes.
    acc1 = jnp.dot(xpad_ref[0:28, :], w1b_ref[0], preferred_element_type=f32)
    for ky in range(1, 5):
        acc1 = acc1 + jnp.dot(xpad_ref[ky:ky + 28, :], w1b_ref[ky],
                              preferred_element_type=f32)           # (28, 168)
    act1 = _sigmoid(acc1 + b1_ref[...])                             # (28, 168)
    s2_ref[...] = jnp.dot(
        ph1_ref[...],
        jnp.dot(act1, pw1_ref[...], preferred_element_type=f32),
        preferred_element_type=f32)                                 # (14, 84)

    # ---- C3 (6->16, 5x5) + sigmoid + S4 (2x2 avg pool) --------------------
    # Same banded trick on the wide layout: 5 matmuls, no im2col.
    acc3 = jnp.dot(s2_ref[0:10, :], w3b_ref[0], preferred_element_type=f32)
    for ky in range(1, 5):
        acc3 = acc3 + jnp.dot(s2_ref[ky:ky + 10, :], w3b_ref[ky],
                              preferred_element_type=f32)           # (10, 160)
    act3 = _sigmoid(acc3 + b3_ref[...])                             # (10, 160)
    s4_ref[...] = jnp.dot(
        ph3_ref[...],
        jnp.dot(act3, pw3_ref[...], preferred_element_type=f32),
        preferred_element_type=f32)                                 # (5, 80)

    # ---- C5 (16->120, 5x5 -> 1x1), no activation ---------------------------
    acc5 = b5_ref[...]                                              # (1, 120)
    for ky in range(5):
        acc5 = acc5 + jnp.dot(s4_ref[ky:ky + 1, :], w5m_ref[ky],
                              preferred_element_type=f32)           # (1, 120)

    # ---- F6 and output head (row form -> lane-dense final store) ----------
    h6 = jnp.dot(acc5, w6t_ref[...], preferred_element_type=f32) + b6_ref[...]
    out = jnp.dot(h6, wot_ref[...], preferred_element_type=f32) + bo_ref[...]
    out_ref[0] = out                                                # (1, 10)


# ---------------------------------------------------------------------------
# One-time parameter preparation (hoisted out of the forward pass)
# ---------------------------------------------------------------------------

_WEIGHT_ORDER = ["w1b", "b1r", "pw1bd", "ph1", "w3b", "b3r", "pw3bd", "ph3",
                 "w5m", "b5r", "w6t", "b6r", "wot", "bor"]


def prepare_params(raw):
    """Pre-transpose / pre-reshape all weights into the kernel's layouts."""
    f32 = jnp.float32

    # conv1 banded weights: w1b[ky][c, co*28+ox] = w1[co,0,ky, c - ox + 2]
    # (the +2 absorbs the horizontal zero padding).
    w1 = raw["c1_w"].astype(f32)                                    # (6,1,5,5)
    w1b = jnp.zeros((5, 28, 6, 28), f32)                            # [ky,c,co,ox]
    for kx in range(5):
        e = jnp.eye(28, 28, k=-(kx - 2), dtype=f32)                 # c == ox+kx-2
        w1b = w1b + w1[:, 0, :, kx].T[:, None, :, None] * e[None, :, None, :]
    w1b = w1b.reshape(5, 28, 168)
    b1r = jnp.repeat(raw["c1_b"].astype(f32), 28)[None, :]          # (1, 168)

    # 2x2 average pools as constant matrices on the wide (channel-major) layout.
    pw1 = 0.5 * jnp.kron(jnp.eye(14, dtype=f32), jnp.ones((2, 1), f32))  # (28,14)
    pw1bd = jnp.kron(jnp.eye(6, dtype=f32), pw1)                    # (168, 84)
    ph1 = 0.5 * jnp.kron(jnp.eye(14, dtype=f32), jnp.ones((1, 2), f32))  # (14,28)

    # conv3 banded weights: w3b[ky][ci*14+c, co*10+ox] = w3[co,ci,ky, c-ox]
    w3 = raw["c3_w"].astype(f32)                                    # (16,6,5,5)
    w3b = jnp.zeros((5, 6, 14, 16, 10), f32)                        # [ky,ci,c,co,ox]
    for kx in range(5):
        e = jnp.eye(14, 10, k=-kx, dtype=f32)                       # c == ox+kx
        w3b = w3b + (w3[:, :, :, kx].transpose(2, 1, 0)[:, :, None, :, None]
                     * e[None, None, :, None, :])
    w3b = w3b.reshape(5, 84, 160)
    b3r = jnp.repeat(raw["c3_b"].astype(f32), 10)[None, :]          # (1, 160)

    pw3 = 0.5 * jnp.kron(jnp.eye(5, dtype=f32), jnp.ones((2, 1), f32))   # (10, 5)
    pw3bd = jnp.kron(jnp.eye(16, dtype=f32), pw3)                   # (160, 80)
    ph3 = 0.5 * jnp.kron(jnp.eye(5, dtype=f32), jnp.ones((1, 2), f32))   # (5, 10)

    # conv5: w5m[ky][ci*5+kx, co] = w5[co,ci,ky,kx]
    w5m = raw["c5_w"].astype(f32).transpose(2, 1, 3, 0).reshape(5, 80, 120)
    b5r = raw["c5_b"].astype(f32)[None, :]                          # (1, 120)

    w6t = raw["f6_w"].astype(f32).T                                 # (120, 84)
    b6r = raw["f6_b"].astype(f32)[None, :]                          # (1, 84)
    wot = raw["out_w"].astype(f32).T                                # (84, 10)
    bor = raw["out_b"].astype(f32)[None, :]                         # (1, 10)

    return dict(w1b=w1b, b1r=b1r, pw1bd=pw1bd, ph1=ph1,
                w3b=w3b, b3r=b3r, pw3bd=pw3bd, ph3=ph3,
                w5m=w5m, b5r=b5r, w6t=w6t, b6r=b6r, wot=wot, bor=bor)


# ---------------------------------------------------------------------------
# Forward pass: one pallas_call, grid over the batch
# ---------------------------------------------------------------------------

@jax.jit
def lenet5_forward(prep, x):
    """x: (N, 1, 28, 28) float32 NCHW  ->  logits (N, 10)."""
    N = x.shape[0]
    x = x.astype(jnp.float32)
    weights = [prep[k] for k in _WEIGHT_ORDER]

    def const_spec(a):
        nd = a.ndim
        return pl.BlockSpec(a.shape, lambda i, nd=nd: (0,) * nd)

    out = pl.pallas_call(
        _lenet5_kernel,
        out_shape=jax.ShapeDtypeStruct((N, 1, 10), jnp.float32),
        grid=(N,),
        in_specs=[pl.BlockSpec((1, 1, 28, 28), lambda i: (i, 0, 0, 0))]
                 + [const_spec(a) for a in weights],
        out_specs=pl.BlockSpec((1, 1, 10), lambda i: (i, 0, 0)),
        scratch_shapes=[
            pltpu.VMEM((32, 28), jnp.float32),   # vertically padded image
            pltpu.VMEM((14, 84), jnp.float32),   # pooled C1 activations (wide)
            pltpu.VMEM((5, 80), jnp.float32),    # pooled C3 activations (wide)
        ],
        compiler_params=pltpu.CompilerParams(
            dimension_semantics=("parallel",)),
    )(x, *weights)
    return out[:, 0, :]


# ---------------------------------------------------------------------------
# Deterministic PyTorch-default-style parameter init
# ---------------------------------------------------------------------------

def _init_pair(key, w_shape, fan_in):
    k1, k2 = jax.random.split(key)
    bound = 1.0 / math.sqrt(fan_in)
    w = jax.random.uniform(k1, w_shape, jnp.float32, -bound, bound)
    b = jax.random.uniform(k2, (w_shape[0],), jnp.float32, -bound, bound)
    return w, b


def init_lenet5_params(key):
    ks = jax.random.split(key, 5)
    p = {}
    p["c1_w"], p["c1_b"] = _init_pair(ks[0], (6, 1, 5, 5), 1 * 5 * 5)
    p["c3_w"], p["c3_b"] = _init_pair(ks[1], (16, 6, 5, 5), 6 * 5 * 5)
    p["c5_w"], p["c5_b"] = _init_pair(ks[2], (120, 16, 5, 5), 16 * 5 * 5)
    p["f6_w"], p["f6_b"] = _init_pair(ks[3], (84, 120), 120)
    p["out_w"], p["out_b"] = _init_pair(ks[4], (10, 84), 84)
    return p


# ---------------------------------------------------------------------------
# Pure-JAX reference (independent formulation) for a correctness check
# ---------------------------------------------------------------------------

def lenet5_reference(raw, x):
    hp = jax.lax.Precision.HIGHEST

    def conv(h, w, b, pad):
        out = jax.lax.conv_general_dilated(
            h, w, window_strides=(1, 1), padding=[(pad, pad), (pad, pad)],
            dimension_numbers=("NCHW", "OIHW", "NCHW"), precision=hp)
        return out + b[None, :, None, None]

    def pool(h):
        n, c, hh, ww = h.shape
        return h.reshape(n, c, hh // 2, 2, ww // 2, 2).mean(axis=(3, 5))

    h = pool(jax.nn.sigmoid(conv(x, raw["c1_w"], raw["c1_b"], 2)))
    h = pool(jax.nn.sigmoid(conv(h, raw["c3_w"], raw["c3_b"], 0)))
    h = conv(h, raw["c5_w"], raw["c5_b"], 0).reshape(x.shape[0], -1)
    h = jnp.dot(h, raw["f6_w"].T, precision=hp) + raw["f6_b"]
    return jnp.dot(h, raw["out_w"].T, precision=hp) + raw["out_b"]


# ---------------------------------------------------------------------------

if __name__ == "__main__":
    key = jax.random.PRNGKey(0)
    k_params, k_input = jax.random.split(key)

    raw = init_lenet5_params(k_params)
    prep = prepare_params(raw)          # one-time weight preparation (hoisted)

    # Module geometry (c5 needs a 5x5 map after s4) implies 28x28 inputs.
    x = jax.random.normal(k_input, (2, 1, 28, 28), dtype=jnp.float32)

    y = jax.block_until_ready(lenet5_forward(prep, x))
    assert y.shape == (2, 10), y.shape

    y_ref = lenet5_reference(raw, x)
    err = float(jnp.max(jnp.abs(y - y_ref)))
    assert err < 1e-3, f"max abs error vs reference = {err}"

    print("KERNEL_OK")
</pallas_src>

<mosaic_0001>
module attributes {stable_mosaic.version = 11 : i64} {
  func.func @_lenet5_kernel(%arg0: i32, %arg1: memref<1x1x28x28xf32, #tpu.memory_space<vmem>>, %arg2: memref<5x28x168xf32, #tpu.memory_space<vmem>>, %arg3: memref<1x168xf32, #tpu.memory_space<vmem>>, %arg4: memref<168x84xf32, #tpu.memory_space<vmem>>, %arg5: memref<14x28xf32, #tpu.memory_space<vmem>>, %arg6: memref<5x84x160xf32, #tpu.memory_space<vmem>>, %arg7: memref<1x160xf32, #tpu.memory_space<vmem>>, %arg8: memref<160x80xf32, #tpu.memory_space<vmem>>, %arg9: memref<5x10xf32, #tpu.memory_space<vmem>>, %arg10: memref<5x80x120xf32, #tpu.memory_space<vmem>>, %arg11: memref<1x120xf32, #tpu.memory_space<vmem>>, %arg12: memref<120x84xf32, #tpu.memory_space<vmem>>, %arg13: memref<1x84xf32, #tpu.memory_space<vmem>>, %arg14: memref<84x10xf32, #tpu.memory_space<vmem>>, %arg15: memref<1x10xf32, #tpu.memory_space<vmem>>, %arg16: memref<1x1x10xf32, #tpu.memory_space<vmem>>, %arg17: memref<32x28xf32, #tpu.memory_space<vmem>>, %arg18: memref<14x84xf32, #tpu.memory_space<vmem>>, %arg19: memref<5x80xf32, #tpu.memory_space<vmem>>) attributes {dimension_semantics = [#tpu.dimension_semantics<parallel>], iteration_bounds = array<i64: 2>, scalar_prefetch = 0 : i64, scratch_operands = 3 : i64, tpu.core_type = #tpu.core_type<tc>, window_params = [{transform_indices = @transform_0, window_bounds = array<i64: 1, 1, 28, 28>}, {pipeline_mode = #tpu.pipeline_mode<synchronous>, transform_indices = @transform_1, window_bounds = array<i64: 5, 28, 168>}, {pipeline_mode = #tpu.pipeline_mode<synchronous>, transform_indices = @transform_2, window_bounds = array<i64: 1, 168>}, {pipeline_mode = #tpu.pipeline_mode<synchronous>, transform_indices = @transform_3, window_bounds = array<i64: 168, 84>}, {pipeline_mode = #tpu.pipeline_mode<synchronous>, transform_indices = @transform_4, window_bounds = array<i64: 14, 28>}, {pipeline_mode = #tpu.pipeline_mode<synchronous>, transform_indices = @transform_5, window_bounds = array<i64: 5, 84, 160>}, {pipeline_mode = #tpu.pipeline_mode<synchronous>, transform_indices = @transform_6, window_bounds = array<i64: 1, 160>}, {pipeline_mode = #tpu.pipeline_mode<synchronous>, transform_indices = @transform_7, window_bounds = array<i64: 160, 80>}, {pipeline_mode = #tpu.pipeline_mode<synchronous>, transform_indices = @transform_8, window_bounds = array<i64: 5, 10>}, {pipeline_mode = #tpu.pipeline_mode<synchronous>, transform_indices = @transform_9, window_bounds = array<i64: 5, 80, 120>}, {pipeline_mode = #tpu.pipeline_mode<synchronous>, transform_indices = @transform_10, window_bounds = array<i64: 1, 120>}, {pipeline_mode = #tpu.pipeline_mode<synchronous>, transform_indices = @transform_11, window_bounds = array<i64: 120, 84>}, {pipeline_mode = #tpu.pipeline_mode<synchronous>, transform_indices = @transform_12, window_bounds = array<i64: 1, 84>}, {pipeline_mode = #tpu.pipeline_mode<synchronous>, transform_indices = @transform_13, window_bounds = array<i64: 84, 10>}, {pipeline_mode = #tpu.pipeline_mode<synchronous>, transform_indices = @transform_14, window_bounds = array<i64: 1, 10>}, {transform_indices = @transform_15, window_bounds = array<i64: 1, 1, 10>}]} {
    %cst = arith.constant 0.000000e+00 : f32
    %0 = vector.broadcast %cst : f32 to vector<32x28xf32>
    %c0 = arith.constant 0 : index
    %c0_0 = arith.constant 0 : index
    %1 = vector.load %arg17[%c0, %c0_0] : memref<32x28xf32, #tpu.memory_space<vmem>>, vector<32x28xf32>
    tpu.vector_store %arg17[%c0, %c0_0], %0 {strides = array<i32>} : memref<32x28xf32, #tpu.memory_space<vmem>>, vector<32x28xf32>,
    %c0_1 = arith.constant 0 : index
    %c0_2 = arith.constant 0 : index
    %c0_3 = arith.constant 0 : index
    %c0_4 = arith.constant 0 : index
    %2 = vector.load %arg1[%c0_1, %c0_2, %c0_3, %c0_4] : memref<1x1x28x28xf32, #tpu.memory_space<vmem>>, vector<1x1x28x28xf32>
    %3 = vector.shape_cast %2 : vector<1x1x28x28xf32> to vector<28x28xf32>
    %c2 = arith.constant 2 : index
    %c0_5 = arith.constant 0 : index
    %4 = vector.load %arg17[%c2, %c0_5] : memref<32x28xf32, #tpu.memory_space<vmem>>, vector<28x28xf32>
    tpu.vector_store %arg17[%c2, %c0_5], %3 {strides = array<i32>} : memref<32x28xf32, #tpu.memory_space<vmem>>, vector<28x28xf32>,
    %c0_6 = arith.constant 0 : index
    %c0_7 = arith.constant 0 : index
    %5 = vector.load %arg17[%c0_6, %c0_7] : memref<32x28xf32, #tpu.memory_space<vmem>>, vector<28x28xf32>
    %c0_8 = arith.constant 0 : index
    %c0_9 = arith.constant 0 : index
    %c0_10 = arith.constant 0 : index
    %6 = vector.load %arg2[%c0_8, %c0_9, %c0_10] : memref<5x28x168xf32, #tpu.memory_space<vmem>>, vector<1x28x168xf32>
    %7 = vector.shape_cast %6 : vector<1x28x168xf32> to vector<28x168xf32>
    %cst_11 = arith.constant dense<0.000000e+00> : vector<28x168xf32>
    %8 = tpu.matmul %5, %7, %cst_11 {dimension_numbers = #tpu.dot_dimension_numbers<[1], [0], [0], [1], [0, 0, 1, 1], [], []>} : vector<28x28xf32>, vector<28x168xf32>, vector<28x168xf32> -> vector<28x168xf32>
    %c1 = arith.constant 1 : index
    %c0_12 = arith.constant 0 : index
    %9 = vector.load %arg17[%c1, %c0_12] : memref<32x28xf32, #tpu.memory_space<vmem>>, vector<28x28xf32>
    %c1_13 = arith.constant 1 : index
    %c0_14 = arith.constant 0 : index
    %c0_15 = arith.constant 0 : index
    %10 = vector.load %arg2[%c1_13, %c0_14, %c0_15] : memref<5x28x168xf32, #tpu.memory_space<vmem>>, vector<1x28x168xf32>
    %11 = vector.shape_cast %10 : vector<1x28x168xf32> to vector<28x168xf32>
    %cst_16 = arith.constant dense<0.000000e+00> : vector<28x168xf32>
    %12 = tpu.matmul %9, %11, %cst_16 {dimension_numbers = #tpu.dot_dimension_numbers<[1], [0], [0], [1], [0, 0, 1, 1], [], []>} : vector<28x28xf32>, vector<28x168xf32>, vector<28x168xf32> -> vector<28x168xf32>
    %13 = arith.addf %8, %12 : vector<28x168xf32>
    %c2_17 = arith.constant 2 : index
    %c0_18 = arith.constant 0 : index
    %14 = vector.load %arg17[%c2_17, %c0_18] : memref<32x28xf32, #tpu.memory_space<vmem>>, vector<28x28xf32>
    %c2_19 = arith.constant 2 : index
    %c0_20 = arith.constant 0 : index
    %c0_21 = arith.constant 0 : index
    %15 = vector.load %arg2[%c2_19, %c0_20, %c0_21] : memref<5x28x168xf32, #tpu.memory_space<vmem>>, vector<1x28x168xf32>
    %16 = vector.shape_cast %15 : vector<1x28x168xf32> to vector<28x168xf32>
    %cst_22 = arith.constant dense<0.000000e+00> : vector<28x168xf32>
    %17 = tpu.matmul %14, %16, %cst_22 {dimension_numbers = #tpu.dot_dimension_numbers<[1], [0], [0], [1], [0, 0, 1, 1], [], []>} : vector<28x28xf32>, vector<28x168xf32>, vector<28x168xf32> -> vector<28x168xf32>
    %18 = arith.addf %13, %17 : vector<28x168xf32>
    %c3 = arith.constant 3 : index
    %c0_23 = arith.constant 0 : index
    %19 = vector.load %arg17[%c3, %c0_23] : memref<32x28xf32, #tpu.memory_space<vmem>>, vector<28x28xf32>
    %c3_24 = arith.constant 3 : index
    %c0_25 = arith.constant 0 : index
    %c0_26 = arith.constant 0 : index
    %20 = vector.load %arg2[%c3_24, %c0_25, %c0_26] : memref<5x28x168xf32, #tpu.memory_space<vmem>>, vector<1x28x168xf32>
    %21 = vector.shape_cast %20 : vector<1x28x168xf32> to vector<28x168xf32>
    %cst_27 = arith.constant dense<0.000000e+00> : vector<28x168xf32>
    %22 = tpu.matmul %19, %21, %cst_27 {dimension_numbers = #tpu.dot_dimension_numbers<[1], [0], [0], [1], [0, 0, 1, 1], [], []>} : vector<28x28xf32>, vector<28x168xf32>, vector<28x168xf32> -> vector<28x168xf32>
    %23 = arith.addf %18, %22 : vector<28x168xf32>
    %c4 = arith.constant 4 : index
    %c0_28 = arith.constant 0 : index
    %24 = vector.load %arg17[%c4, %c0_28] : memref<32x28xf32, #tpu.memory_space<vmem>>, vector<28x28xf32>
    %c4_29 = arith.constant 4 : index
    %c0_30 = arith.constant 0 : index
    %c0_31 = arith.constant 0 : index
    %25 = vector.load %arg2[%c4_29, %c0_30, %c0_31] : memref<5x28x168xf32, #tpu.memory_space<vmem>>, vector<1x28x168xf32>
    %26 = vector.shape_cast %25 : vector<1x28x168xf32> to vector<28x168xf32>
    %cst_32 = arith.constant dense<0.000000e+00> : vector<28x168xf32>
    %27 = tpu.matmul %24, %26, %cst_32 {dimension_numbers = #tpu.dot_dimension_numbers<[1], [0], [0], [1], [0, 0, 1, 1], [], []>} : vector<28x28xf32>, vector<28x168xf32>, vector<28x168xf32> -> vector<28x168xf32>
    %28 = arith.addf %23, %27 : vector<28x168xf32>
    %c0_33 = arith.constant 0 : index
    %c0_34 = arith.constant 0 : index
    %29 = vector.load %arg3[%c0_33, %c0_34] : memref<1x168xf32, #tpu.memory_space<vmem>>, vector<1x168xf32>
    %30 = vector.broadcast %29 : vector<1x168xf32> to vector<28x168xf32>
    %31 = arith.addf %28, %30 : vector<28x168xf32>
    %cst_35 = arith.constant 0.000000e+00 : f32
    %32 = vector.broadcast %cst_35 : f32 to vector<28x168xf32>
    %33 = arith.subf %32, %31 : vector<28x168xf32>
    %34 = math.exp %33 : vector<28x168xf32>
    %cst_36 = arith.constant 1.000000e+00 : f32
    %35 = vector.broadcast %cst_36 : f32 to vector<28x168xf32>
    %36 = arith.addf %35, %34 : vector<28x168xf32>
    %cst_37 = arith.constant 1.000000e+00 : f32
    %37 = vector.broadcast %cst_37 : f32 to vector<28x168xf32>
    %38 = arith.divf %37, %36 : vector<28x168xf32>
    %c0_38 = arith.constant 0 : index
    %c0_39 = arith.constant 0 : index
    %39 = vector.load %arg5[%c0_38, %c0_39] : memref<14x28xf32, #tpu.memory_space<vmem>>, vector<14x28xf32>
    %c0_40 = arith.constant 0 : index
    %c0_41 = arith.constant 0 : index
    %40 = vector.load %arg4[%c0_40, %c0_41] : memref<168x84xf32, #tpu.memory_space<vmem>>, vector<168x84xf32>
    %cst_42 = arith.constant dense<0.000000e+00> : vector<28x84xf32>
    %41 = tpu.matmul %38, %40, %cst_42 {dimension_numbers = #tpu.dot_dimension_numbers<[1], [0], [0], [1], [0, 0, 1, 1], [], []>} : vector<28x168xf32>, vector<168x84xf32>, vector<28x84xf32> -> vector<28x84xf32>
    %cst_43 = arith.constant dense<0.000000e+00> : vector<14x84xf32>
    %42 = tpu.matmul %39, %41, %cst_43 {dimension_numbers = #tpu.dot_dimension_numbers<[1], [0], [0], [1], [0, 0, 1, 1], [], []>} : vector<14x28xf32>, vector<28x84xf32>, vector<14x84xf32> -> vector<14x84xf32>
    %c0_44 = arith.constant 0 : index
    %c0_45 = arith.constant 0 : index
    %43 = vector.load %arg18[%c0_44, %c0_45] : memref<14x84xf32, #tpu.memory_space<vmem>>, vector<14x84xf32>
    tpu.vector_store %arg18[%c0_44, %c0_45], %42 {strides = array<i32>} : memref<14x84xf32, #tpu.memory_space<vmem>>, vector<14x84xf32>,
    %c0_46 = arith.constant 0 : index
    %c0_47 = arith.constant 0 : index
    %44 = vector.load %arg18[%c0_46, %c0_47] : memref<14x84xf32, #tpu.memory_space<vmem>>, vector<10x84xf32>
    %c0_48 = arith.constant 0 : index
    %c0_49 = arith.constant 0 : index
    %c0_50 = arith.constant 0 : index
    %45 = vector.load %arg6[%c0_48, %c0_49, %c0_50] : memref<5x84x160xf32, #tpu.memory_space<vmem>>, vector<1x84x160xf32>
    %46 = vector.shape_cast %45 : vector<1x84x160xf32> to vector<84x160xf32>
    %cst_51 = arith.constant dense<0.000000e+00> : vector<10x160xf32>
    %47 = tpu.matmul %44, %46, %cst_51 {dimension_numbers = #tpu.dot_dimension_numbers<[1], [0], [0], [1], [0, 0, 1, 1], [], []>} : vector<10x84xf32>, vector<84x160xf32>, vector<10x160xf32> -> vector<10x160xf32>
    %c1_52 = arith.constant 1 : index
    %c0_53 = arith.constant 0 : index
    %48 = vector.load %arg18[%c1_52, %c0_53] : memref<14x84xf32, #tpu.memory_space<vmem>>, vector<10x84xf32>
    %c1_54 = arith.constant 1 : index
    %c0_55 = arith.constant 0 : index
    %c0_56 = arith.constant 0 : index
    %49 = vector.load %arg6[%c1_54, %c0_55, %c0_56] : memref<5x84x160xf32, #tpu.memory_space<vmem>>, vector<1x84x160xf32>
    %50 = vector.shape_cast %49 : vector<1x84x160xf32> to vector<84x160xf32>
    %cst_57 = arith.constant dense<0.000000e+00> : vector<10x160xf32>
    %51 = tpu.matmul %48, %50, %cst_57 {dimension_numbers = #tpu.dot_dimension_numbers<[1], [0], [0], [1], [0, 0, 1, 1], [], []>} : vector<10x84xf32>, vector<84x160xf32>, vector<10x160xf32> -> vector<10x160xf32>
    %52 = arith.addf %47, %51 : vector<10x160xf32>
    %c2_58 = arith.constant 2 : index
    %c0_59 = arith.constant 0 : index
    %53 = vector.load %arg18[%c2_58, %c0_59] : memref<14x84xf32, #tpu.memory_space<vmem>>, vector<10x84xf32>
    %c2_60 = arith.constant 2 : index
    %c0_61 = arith.constant 0 : index
    %c0_62 = arith.constant 0 : index
    %54 = vector.load %arg6[%c2_60, %c0_61, %c0_62] : memref<5x84x160xf32, #tpu.memory_space<vmem>>, vector<1x84x160xf32>
    %55 = vector.shape_cast %54 : vector<1x84x160xf32> to vector<84x160xf32>
    %cst_63 = arith.constant dense<0.000000e+00> : vector<10x160xf32>
    %56 = tpu.matmul %53, %55, %cst_63 {dimension_numbers = #tpu.dot_dimension_numbers<[1], [0], [0], [1], [0, 0, 1, 1], [], []>} : vector<10x84xf32>, vector<84x160xf32>, vector<10x160xf32> -> vector<10x160xf32>
    %57 = arith.addf %52, %56 : vector<10x160xf32>
    %c3_64 = arith.constant 3 : index
    %c0_65 = arith.constant 0 : index
    %58 = vector.load %arg18[%c3_64, %c0_65] : memref<14x84xf32, #tpu.memory_space<vmem>>, vector<10x84xf32>
    %c3_66 = arith.constant 3 : index
    %c0_67 = arith.constant 0 : index
    %c0_68 = arith.constant 0 : index
    %59 = vector.load %arg6[%c3_66, %c0_67, %c0_68] : memref<5x84x160xf32, #tpu.memory_space<vmem>>, vector<1x84x160xf32>
    %60 = vector.shape_cast %59 : vector<1x84x160xf32> to vector<84x160xf32>
    %cst_69 = arith.constant dense<0.000000e+00> : vector<10x160xf32>
    %61 = tpu.matmul %58, %60, %cst_69 {dimension_numbers = #tpu.dot_dimension_numbers<[1], [0], [0], [1], [0, 0, 1, 1], [], []>} : vector<10x84xf32>, vector<84x160xf32>, vector<10x160xf32> -> vector<10x160xf32>
    %62 = arith.addf %57, %61 : vector<10x160xf32>
    %c4_70 = arith.constant 4 : index
    %c0_71 = arith.constant 0 : index
    %63 = vector.load %arg18[%c4_70, %c0_71] : memref<14x84xf32, #tpu.memory_space<vmem>>, vector<10x84xf32>
    %c4_72 = arith.constant 4 : index
    %c0_73 = arith.constant 0 : index
    %c0_74 = arith.constant 0 : index
    %64 = vector.load %arg6[%c4_72, %c0_73, %c0_74] : memref<5x84x160xf32, #tpu.memory_space<vmem>>, vector<1x84x160xf32>
    %65 = vector.shape_cast %64 : vector<1x84x160xf32> to vector<84x160xf32>
    %cst_75 = arith.constant dense<0.000000e+00> : vector<10x160xf32>
    %66 = tpu.matmul %63, %65, %cst_75 {dimension_numbers = #tpu.dot_dimension_numbers<[1], [0], [0], [1], [0, 0, 1, 1], [], []>} : vector<10x84xf32>, vector<84x160xf32>, vector<10x160xf32> -> vector<10x160xf32>
    %67 = arith.addf %62, %66 : vector<10x160xf32>
    %c0_76 = arith.constant 0 : index
    %c0_77 = arith.constant 0 : index
    %68 = vector.load %arg7[%c0_76, %c0_77] : memref<1x160xf32, #tpu.memory_space<vmem>>, vector<1x160xf32>
    %69 = vector.broadcast %68 : vector<1x160xf32> to vector<10x160xf32>
    %70 = arith.addf %67, %69 : vector<10x160xf32>
    %cst_78 = arith.constant 0.000000e+00 : f32
    %71 = vector.broadcast %cst_78 : f32 to vector<10x160xf32>
    %72 = arith.subf %71, %70 : vector<10x160xf32>
    %73 = math.exp %72 : vector<10x160xf32>
    %cst_79 = arith.constant 1.000000e+00 : f32
    %74 = vector.broadcast %cst_79 : f32 to vector<10x160xf32>
    %75 = arith.addf %74, %73 : vector<10x160xf32>
    %cst_80 = arith.constant 1.000000e+00 : f32
    %76 = vector.broadcast %cst_80 : f32 to vector<10x160xf32>
    %77 = arith.divf %76, %75 : vector<10x160xf32>
    %c0_81 = arith.constant 0 : index
    %c0_82 = arith.constant 0 : index
    %78 = vector.load %arg9[%c0_81, %c0_82] : memref<5x10xf32, #tpu.memory_space<vmem>>, vector<5x10xf32>
    %c0_83 = arith.constant 0 : index
    %c0_84 = arith.constant 0 : index
    %79 = vector.load %arg8[%c0_83, %c0_84] : memref<160x80xf32, #tpu.memory_space<vmem>>, vector<160x80xf32>
    %cst_85 = arith.constant dense<0.000000e+00> : vector<10x80xf32>
    %80 = tpu.matmul %77, %79, %cst_85 {dimension_numbers = #tpu.dot_dimension_numbers<[1], [0], [0], [1], [0, 0, 1, 1], [], []>} : vector<10x160xf32>, vector<160x80xf32>, vector<10x80xf32> -> vector<10x80xf32>
    %cst_86 = arith.constant dense<0.000000e+00> : vector<5x80xf32>
    %81 = tpu.matmul %78, %80, %cst_86 {dimension_numbers = #tpu.dot_dimension_numbers<[1], [0], [0], [1], [0, 0, 1, 1], [], []>} : vector<5x10xf32>, vector<10x80xf32>, vector<5x80xf32> -> vector<5x80xf32>
    %c0_87 = arith.constant 0 : index
    %c0_88 = arith.constant 0 : index
    %82 = vector.load %arg19[%c0_87, %c0_88] : memref<5x80xf32, #tpu.memory_space<vmem>>, vector<5x80xf32>
    tpu.vector_store %arg19[%c0_87, %c0_88], %81 {strides = array<i32>} : memref<5x80xf32, #tpu.memory_space<vmem>>, vector<5x80xf32>,
    %c0_89 = arith.constant 0 : index
    %c0_90 = arith.constant 0 : index
    %83 = vector.load %arg11[%c0_89, %c0_90] : memref<1x120xf32, #tpu.memory_space<vmem>>, vector<1x120xf32>
    %c0_91 = arith.constant 0 : index
    %c0_92 = arith.constant 0 : index
    %84 = vector.load %arg19[%c0_91, %c0_92] : memref<5x80xf32, #tpu.memory_space<vmem>>, vector<1x80xf32>
    %c0_93 = arith.constant 0 : index
    %c0_94 = arith.constant 0 : index
    %c0_95 = arith.constant 0 : index
    %85 = vector.load %arg10[%c0_93, %c0_94, %c0_95] : memref<5x80x120xf32, #tpu.memory_space<vmem>>, vector<1x80x120xf32>
    %86 = vector.shape_cast %85 : vector<1x80x120xf32> to vector<80x120xf32>
    %cst_96 = arith.constant dense<0.000000e+00> : vector<1x120xf32>
    %87 = tpu.matmul %84, %86, %cst_96 {dimension_numbers = #tpu.dot_dimension_numbers<[1], [0], [0], [1], [0, 0, 1, 1], [], []>} : vector<1x80xf32>, vector<80x120xf32>, vector<1x120xf32> -> vector<1x120xf32>
    %88 = arith.addf %83, %87 : vector<1x120xf32>
    %c1_97 = arith.constant 1 : index
    %c0_98 = arith.constant 0 : index
    %89 = vector.load %arg19[%c1_97, %c0_98] : memref<5x80xf32, #tpu.memory_space<vmem>>, vector<1x80xf32>
    %c1_99 = arith.constant 1 : index
    %c0_100 = arith.constant 0 : index
    %c0_101 = arith.constant 0 : index
    %90 = vector.load %arg10[%c1_99, %c0_100, %c0_101] : memref<5x80x120xf32, #tpu.memory_space<vmem>>, vector<1x80x120xf32>
    %91 = vector.shape_cast %90 : vector<1x80x120xf32> to vector<80x120xf32>
    %cst_102 = arith.constant dense<0.000000e+00> : vector<1x120xf32>
    %92 = tpu.matmul %89, %91, %cst_102 {dimension_numbers = #tpu.dot_dimension_numbers<[1], [0], [0], [1], [0, 0, 1, 1], [], []>} : vector<1x80xf32>, vector<80x120xf32>, vector<1x120xf32> -> vector<1x120xf32>
    %93 = arith.addf %88, %92 : vector<1x120xf32>
    %c2_103 = arith.constant 2 : index
    %c0_104 = arith.constant 0 : index
    %94 = vector.load %arg19[%c2_103, %c0_104] : memref<5x80xf32, #tpu.memory_space<vmem>>, vector<1x80xf32>
    %c2_105 = arith.constant 2 : index
    %c0_106 = arith.constant 0 : index
    %c0_107 = arith.constant 0 : index
    %95 = vector.load %arg10[%c2_105, %c0_106, %c0_107] : memref<5x80x120xf32, #tpu.memory_space<vmem>>, vector<1x80x120xf32>
    %96 = vector.shape_cast %95 : vector<1x80x120xf32> to vector<80x120xf32>
    %cst_108 = arith.constant dense<0.000000e+00> : vector<1x120xf32>
    %97 = tpu.matmul %94, %96, %cst_108 {dimension_numbers = #tpu.dot_dimension_numbers<[1], [0], [0], [1], [0, 0, 1, 1], [], []>} : vector<1x80xf32>, vector<80x120xf32>, vector<1x120xf32> -> vector<1x120xf32>
    %98 = arith.addf %93, %97 : vector<1x120xf32>
    %c3_109 = arith.constant 3 : index
    %c0_110 = arith.constant 0 : index
    %99 = vector.load %arg19[%c3_109, %c0_110] : memref<5x80xf32, #tpu.memory_space<vmem>>, vector<1x80xf32>
    %c3_111 = arith.constant 3 : index
    %c0_112 = arith.constant 0 : index
    %c0_113 = arith.constant 0 : index
    %100 = vector.load %arg10[%c3_111, %c0_112, %c0_113] : memref<5x80x120xf32, #tpu.memory_space<vmem>>, vector<1x80x120xf32>
    %101 = vector.shape_cast %100 : vector<1x80x120xf32> to vector<80x120xf32>
    %cst_114 = arith.constant dense<0.000000e+00> : vector<1x120xf32>
    %102 = tpu.matmul %99, %101, %cst_114 {dimension_numbers = #tpu.dot_dimension_numbers<[1], [0], [0], [1], [0, 0, 1, 1], [], []>} : vector<1x80xf32>, vector<80x120xf32>, vector<1x120xf32> -> vector<1x120xf32>
    %103 = arith.addf %98, %102 : vector<1x120xf32>
    %c4_115 = arith.constant 4 : index
    %c0_116 = arith.constant 0 : index
    %104 = vector.load %arg19[%c4_115, %c0_116] : memref<5x80xf32, #tpu.memory_space<vmem>>, vector<1x80xf32>
    %c4_117 = arith.constant 4 : index
    %c0_118 = arith.constant 0 : index
    %c0_119 = arith.constant 0 : index
    %105 = vector.load %arg10[%c4_117, %c0_118, %c0_119] : memref<5x80x120xf32, #tpu.memory_space<vmem>>, vector<1x80x120xf32>
    %106 = vector.shape_cast %105 : vector<1x80x120xf32> to vector<80x120xf32>
    %cst_120 = arith.constant dense<0.000000e+00> : vector<1x120xf32>
    %107 = tpu.matmul %104, %106, %cst_120 {dimension_numbers = #tpu.dot_dimension_numbers<[1], [0], [0], [1], [0, 0, 1, 1], [], []>} : vector<1x80xf32>, vector<80x120xf32>, vector<1x120xf32> -> vector<1x120xf32>
    %108 = arith.addf %103, %107 : vector<1x120xf32>
    %c0_121 = arith.constant 0 : index
    %c0_122 = arith.constant 0 : index
    %109 = vector.load %arg12[%c0_121, %c0_122] : memref<120x84xf32, #tpu.memory_space<vmem>>, vector<120x84xf32>
    %cst_123 = arith.constant dense<0.000000e+00> : vector<1x84xf32>
    %110 = tpu.matmul %108, %109, %cst_123 {dimension_numbers = #tpu.dot_dimension_numbers<[1], [0], [0], [1], [0, 0, 1, 1], [], []>} : vector<1x120xf32>, vector<120x84xf32>, vector<1x84xf32> -> vector<1x84xf32>
    %c0_124 = arith.constant 0 : index
    %c0_125 = arith.constant 0 : index
    %111 = vector.load %arg13[%c0_124, %c0_125] : memref<1x84xf32, #tpu.memory_space<vmem>>, vector<1x84xf32>
    %112 = arith.addf %110, %111 : vector<1x84xf32>
    %c0_126 = arith.constant 0 : index
    %c0_127 = arith.constant 0 : index
    %113 = vector.load %arg14[%c0_126, %c0_127] : memref<84x10xf32, #tpu.memory_space<vmem>>, vector<84x10xf32>
    %cst_128 = arith.constant dense<0.000000e+00> : vector<1x10xf32>
    %114 = tpu.matmul %112, %113, %cst_128 {dimension_numbers = #tpu.dot_dimension_numbers<[1], [0], [0], [1], [0, 0, 1, 1], [], []>} : vector<1x84xf32>, vector<84x10xf32>, vector<1x10xf32> -> vector<1x10xf32>
    %c0_129 = arith.constant 0 : index
    %c0_130 = arith.constant 0 : index
    %115 = vector.load %arg15[%c0_129, %c0_130] : memref<1x10xf32, #tpu.memory_space<vmem>>, vector<1x10xf32>
    %116 = arith.addf %114, %115 : vector<1x10xf32>
    %c0_131 = arith.constant 0 : index
    %c0_132 = arith.constant 0 : index
    %c0_133 = arith.constant 0 : index
    %117 = vector.load %arg16[%c0_131, %c0_132, %c0_133] : memref<1x1x10xf32, #tpu.memory_space<vmem>>, vector<1x1x10xf32>
    %118 = vector.shape_cast %117 : vector<1x1x10xf32> to vector<1x10xf32>
    %119 = vector.shape_cast %116 : vector<1x10xf32> to vector<1x1x10xf32>
    tpu.vector_store %arg16[%c0_131, %c0_132, %c0_133], %119 {strides = array<i32>} : memref<1x1x10xf32, #tpu.memory_space<vmem>>, vector<1x1x10xf32>,
    return
  }
  func.func @transform_0(%arg0: i32) -> (i32, i32, i32, i32) {
    %c0_i32 = arith.constant 0 : i32
    %c0_i32_0 = arith.constant 0 : i32
    %c0_i32_1 = arith.constant 0 : i32
    %c0_i32_2 = arith.constant 0 : i32
    return %arg0, %c0_i32, %c0_i32_0, %c0_i32_1 : i32, i32, i32, i32
  }
  func.func @transform_1(%arg0: i32) -> (i32, i32, i32) {
    %c0_i32 = arith.constant 0 : i32
    %c0_i32_0 = arith.constant 0 : i32
    %c0_i32_1 = arith.constant 0 : i32
    %c0_i32_2 = arith.constant 0 : i32
    return %c0_i32, %c0_i32_0, %c0_i32_1 : i32, i32, i32
  }
  func.func @transform_2(%arg0: i32) -> (i32, i32) {
    %c0_i32 = arith.constant 0 : i32
    %c0_i32_0 = arith.constant 0 : i32
    %c0_i32_1 = arith.constant 0 : i32
    return %c0_i32, %c0_i32_0 : i32, i32
  }
  func.func @transform_3(%arg0: i32) -> (i32, i32) {
    %c0_i32 = arith.constant 0 : i32
    %c0_i32_0 = arith.constant 0 : i32
    %c0_i32_1 = arith.constant 0 : i32
    return %c0_i32, %c0_i32_0 : i32, i32
  }
  func.func @transform_4(%arg0: i32) -> (i32, i32) {
    %c0_i32 = arith.constant 0 : i32
    %c0_i32_0 = arith.constant 0 : i32
    %c0_i32_1 = arith.constant 0 : i32
    return %c0_i32, %c0_i32_0 : i32, i32
  }
  func.func @transform_5(%arg0: i32) -> (i32, i32, i32) {
    %c0_i32 = arith.constant 0 : i32
    %c0_i32_0 = arith.constant 0 : i32
    %c0_i32_1 = arith.constant 0 : i32
    %c0_i32_2 = arith.constant 0 : i32
    return %c0_i32, %c0_i32_0, %c0_i32_1 : i32, i32, i32
  }
  func.func @transform_6(%arg0: i32) -> (i32, i32) {
    %c0_i32 = arith.constant 0 : i32
    %c0_i32_0 = arith.constant 0 : i32
    %c0_i32_1 = arith.constant 0 : i32
    return %c0_i32, %c0_i32_0 : i32, i32
  }
  func.func @transform_7(%arg0: i32) -> (i32, i32) {
    %c0_i32 = arith.constant 0 : i32
    %c0_i32_0 = arith.constant 0 : i32
    %c0_i32_1 = arith.constant 0 : i32
    return %c0_i32, %c0_i32_0 : i32, i32
  }
  func.func @transform_8(%arg0: i32) -> (i32, i32) {
    %c0_i32 = arith.constant 0 : i32
    %c0_i32_0 = arith.constant 0 : i32
    %c0_i32_1 = arith.constant 0 : i32
    return %c0_i32, %c0_i32_0 : i32, i32
  }
  func.func @transform_9(%arg0: i32) -> (i32, i32, i32) {
    %c0_i32 = arith.constant 0 : i32
    %c0_i32_0 = arith.constant 0 : i32
    %c0_i32_1 = arith.constant 0 : i32
    %c0_i32_2 = arith.constant 0 : i32
    return %c0_i32, %c0_i32_0, %c0_i32_1 : i32, i32, i32
  }
  func.func @transform_10(%arg0: i32) -> (i32, i32) {
    %c0_i32 = arith.constant 0 : i32
    %c0_i32_0 = arith.constant 0 : i32
    %c0_i32_1 = arith.constant 0 : i32
    return %c0_i32, %c0_i32_0 : i32, i32
  }
  func.func @transform_11(%arg0: i32) -> (i32, i32) {
    %c0_i32 = arith.constant 0 : i32
    %c0_i32_0 = arith.constant 0 : i32
    %c0_i32_1 = arith.constant 0 : i32
    return %c0_i32, %c0_i32_0 : i32, i32
  }
  func.func @transform_12(%arg0: i32) -> (i32, i32) {
    %c0_i32 = arith.constant 0 : i32
    %c0_i32_0 = arith.constant 0 : i32
    %c0_i32_1 = arith.constant 0 : i32
    return %c0_i32, %c0_i32_0 : i32, i32
  }
  func.func @transform_13(%arg0: i32) -> (i32, i32) {
    %c0_i32 = arith.constant 0 : i32
    %c0_i32_0 = arith.constant 0 : i32
    %c0_i32_1 = arith.constant 0 : i32
    return %c0_i32, %c0_i32_0 : i32, i32
  }
  func.func @transform_14(%arg0: i32) -> (i32, i32) {
    %c0_i32 = arith.constant 0 : i32
    %c0_i32_0 = arith.constant 0 : i32
    %c0_i32_1 = arith.constant 0 : i32
    return %c0_i32, %c0_i32_0 : i32, i32
  }
  func.func @transform_15(%arg0: i32) -> (i32, i32, i32) {
    %c0_i32 = arith.constant 0 : i32
    %c0_i32_0 = arith.constant 0 : i32
    %c0_i32_1 = arith.constant 0 : i32
    return %arg0, %c0_i32, %c0_i32_0 : i32, i32, i32
  }
}

</mosaic_0001>

<bundles_post_ra>
// kernel: lenet5_forward.1
= control target key start
LH: loop header
LB: loop body
LE: loop exit
PB: predicated region body
PF: predicated region fallthrough
CT: control target
= control target key end

     0   :  { %20 = vsyncpa [#allocation6], 0  ;;  %s4820_s0 = inlined_call_operand.vmem [shape: f32[2,1,28,28], index: 0, kind: input, shape index: {}]   ;;  %s4821_s1 = inlined_call_operand.vmem [shape: f32[5,28,168], index: 1, kind: input, shape index: {}]   ;;  %s4822_s2 = inlined_call_operand.vmem [shape: f32[1,168], index: 2, kind: input, shape index: {}]   ;;  %s4823_s3 = inlined_call_operand.vmem [shape: f32[168,84], index: 3, kind: input, shape index: {}]   ;;  %s4824_s4 = inlined_call_operand.vmem [shape: f32[14,28], index: 4, kind: input, shape index: {}]   ;;  %s4825_s5 = inlined_call_operand.vmem [shape: f32[5,84,160], index: 5, kind: input, shape index: {}]   ;;  %s4826_s6 = inlined_call_operand.vmem [shape: f32[1,160], index: 6, kind: input, shape index: {}]   ;;  %s4827_s7 = inlined_call_operand.vmem [shape: f32[160,80], index: 7, kind: input, shape index: {}]   ;;  %s4828_s8 = inlined_call_operand.vmem [shape: f32[5,10], index: 8, kind: input, shape index: {}]   ;;  %s4829_s9 = inlined_call_operand.vmem [shape: f32[5,80,120], index: 9, kind: input, shape index: {}]   ;;  %s4830_s10 = inlined_call_operand.vmem [shape: f32[1,120], index: 10, kind: input, shape index: {}]   ;;  %s4831_s11 = inlined_call_operand.vmem [shape: f32[120,84], index: 11, kind: input, shape index: {}]   ;;  %s4832_s12 = inlined_call_operand.vmem [shape: f32[1,84], index: 12, kind: input, shape index: {}]   ;;  %s4833_s13 = inlined_call_operand.vmem [shape: f32[84,10], index: 13, kind: input, shape index: {}]   ;;  %s4834_s14 = inlined_call_operand.vmem [shape: f32[1,10], index: 14, kind: input, shape index: {}]   ;;  %s4835_s15 = inlined_call_operand.hbm [shape: f32[2,1,10], index: 15, kind: output, shape index: {}]  }
   0x1   :  { %22 = vsyncpa [#allocation6 + $0x1], 0  ;;  %s3646_s18 = smov 0   ;;  %s3648_s19 = smov 0  }
   0x2   :  { %s3650_s20 = smov 0   ;;  %s3652_s21 = smov 0  }
   0x3 LB: > { %4842 = sst [smem:[#allocation8_spill]] %s3549_s18  ;;  %s3667_s22 = sadd.s32 4294967295, %s3561_s21   ;;  %s3561_s21 = sphi %s3652_s21, %s4853_s21   ;;  %s3557_s20 = sphi %s3650_s20, %s4855_s20   ;;  %s3553_s19 = sphi %s3648_s19, %s4857_s19   ;;  %s3549_s18 = sphi %s3646_s18, %s4856_s18  }
   0x4   : > { %4843 = sst [smem:[#allocation9_spill]] %s3557_s20  ;;  %s2890_s23 = sadd.s32 4294967294, %s3561_s21  }
   0x5   : > { %4844 = sst [smem:[#allocation10_spill]] %s3561_s21  ;;  %s3671_s24 = sadd.s32 1, %s3561_s21  }
   0x6   : > { %4845 = sst [smem:[#allocation11_spill]] %s3671_s24  ;;  %s355_s25 = sadd.s32 1, %s3557_s20 }
   0x7   : > { %s352_s26 = ssub.s32 %s3561_s21, %s3671_s24  ;;  %p365_p0 = scmp.ne.s32.totalorder %s3557_s20, %s3553_s19 }
   0x8   : > { %p353_p1 = scmp.eq.s32.totalorder %s352_s26, 0  ;;  %p366_p2 = scmp.eq.s32.totalorder %s3667_s22, 1 }
   0x9   : > { %p371_p3 = scmp.ne.s32.totalorder %s3553_s19, %s3549_s18  ;;  %p372_p4 = scmp.eq.s32.totalorder %s2890_s23, 1 }
   0xa   : > { %s3682_s27 = scalar_select %p353_p1, %s3557_s20, %s355_s25  }
   0xb   : > { %p3684_p5 = por %p366_p2, %p365_p0  ;;  %p3688_p6 = por %p372_p4, %p371_p3 }
   0xc   : > { %4846 = sst [smem:[#allocation12_spill]] %s3682_s27  ;;  %p2893_p7 = scmp.ge.s32.totalorder %s3561_s21, 1 }
   0xd   : > { %s4848_s29 = scalar_select %p3688_p6, 1, 0 }
   0xe   : > { %p440_p8 = scmp.lt.s32.totalorder %s3561_s21, 3 }
   0xf   : > { %4849 = sst [smem:[#allocation13_spill]] %s4848_s29 }
  0x10   : > { %p441_p9 = pnand %p2893_p7, %p440_p8 }
  0x11   : > { %p487_p10 = scmp.lt.s32.totalorder (!%p441_p9), %s3667_s22, 1  ;;  %s485_s26 = sand.u32 (!%p441_p9), 1, %s3553_s19  }
  0x12   : > { %444 = sbr.rel (%p441_p9) target bundleno = 2045 (0x7fd), region = 80  ;;  %s3125_s29 = sshll.u32 (!%p441_p9), %s3667_s22, 4 }
  0x13   : > { %s486_s18 = scalar_lea.vmem (!%p441_p9), [#allocation5], %s485_s26  ;;  %s4785_s16 = scalar_lea.hbm (!%p441_p9), %s4835_s15, %s3125_s29 }
  0x14   : > { %s2835_s21 = sshll.u32 (!%p441_p9), %s486_s18, 4  ;;  %s2823_s17 = scalar_lea.sflag (!%p441_p9), [#allocation6], %s485_s26  ;;  %s2836_s21 = int_to_ptr.vmem [resolvable:$true] %s2835_s21 }
  0x17   : > { %v2903_v0 = vld [vmem:[%s4821_s1 + $0x78] sm:$0xf]  ;;  %vm543_vm0 = vcmask 1043456   ;;  %v2901_v2 = vld [vmem:[%s4821_s1 + $0x68] sm:$0xff]  ;;  %v2902_v3 = vld [vmem:[%s4821_s1 + $0x70] sm:$0xf] }
  0x18   : > { %v517_v1 = vld [vmem:[%s4821_s1 + $0x38] sm:$0xf]  ;;  %2904 = vmatprep.subr.msk.mxu0 %vm543_vm0, %v2903_v0  ;;  %v516_v4 = vld [vmem:[%s4821_s1 + $0x30] sm:$0xf]  ;;  %v515_v5 = vld [vmem:[%s4821_s1 + $0x28] sm:$0xff]  ;;  %vm492_vm1 = vcmask 228352  }
  0x19   : > { %2910 = vmatprep.subr.msk.mxu1 %vm543_vm0, %v517_v1  ;;  %2905 = vmatpush1.msk.msra.mxu0 %vm543_vm0, %v2902_v3  ;;  %v2900_v6 = vld [vmem:[%s4821_s1 + $0x60] sm:$0xff]  ;;  %v2899_v8 = vld [vmem:[%s4821_s1 + $0x58] sm:$0xff]  ;;  %v2898_v10 = vld [vmem:[%s4821_s1 + $0x50] sm:$0xff]  ;;  %v3563_v12 = vmov 0.0   ;;  %s488_s24 = scalar_select %p487_p10, %s3667_s22, 1  ;;  %vm504_vm2 = vcmask 224256  }
  0x1a   : > { %2911 = vmatpush1.msk.msra.mxu1 %vm543_vm0, %v516_v4  ;;  %v514_v7 = vld [vmem:[%s4821_s1 + $0x20] sm:$0xff]  ;;  %576 = vmatprep.subr.mxu0 %v2901_v2  ;;  %v513_v9 = vld [vmem:[%s4821_s1 + $0x18] sm:$0xff]  ;;  %v512_v11 = vld [vmem:[%s4821_s1 + $0x10] sm:$0xff]  ;;  %493 = vst.msk [vmem:[#allocation2] sm:$0xff] %vm492_vm1, %v3563_v12  ;;  %vm1221_vm3 = vcmask 326656   ;;  %vm1405_vm4 = vcmask 685056  }
  0x1b   : > { %683 = vmatprep.subr.mxu1 %v515_v5  ;;  %494 = vst.msk [vmem:[#allocation2 + $0x8] sm:$0xff] %vm492_vm1, %v3563_v12  ;;  %495 = vst.msk [vmem:[#allocation2 + $0x10] sm:$0xff] %vm492_vm1, %v3563_v12  ;;  %577 = vmatpush1.msra.mxu0 %v2900_v6  ;;  %v2897_v13 = vld [vmem:[%s4821_s1 + $0x48] sm:$0xff]  ;;  %v2896_v15 = vld [vmem:[%s4821_s1 + $0x40] sm:$0xff]  ;;  %s3128_s23 = sshll.u32 %s488_s24, 5  ;;  %vm1403_vm5 = vcmask 687104  }
  0x1c   : > { %496 = vst.msk [vmem:[#allocation2 + $0x18] sm:$0xff] %vm492_vm1, %v3563_v12  ;;  %684 = vmatpush1.msra.mxu1 %v514_v7  ;;  %v511_v14 = vld [vmem:[%s4821_s1 + $0x8] sm:$0xff]  ;;  %578 = vmatprep.subr.mxu0 %v2899_v8  ;;  %v510_v16 = vld [vmem:[%s4821_s1] sm:$0xff]  ;;  %s491_s20 = scalar_lea.vmem %s4820_s0, %s3128_s23  ;;  %v2923_v17 = vld [vmem:[%s4821_s1 + $0xb8] sm:$0xf]  ;;  %vm2049_vm6 = vcmask 261120  }
  0x1d   : > { %685 = vmatprep.subr.mxu1 %v513_v9  ;;  %579 = vmatpush1.msra.mxu0 %v2898_v10  ;;  %v2937_v18 = vld [vmem:[%s4821_s1 + $0xf8] sm:$0xf]  ;;  %v497_v19 = vld [vmem:[%s491_s20] sm:$0xff]  ;;  %v498_v20 = vld [vmem:[%s491_s20 + $0x8] sm:$0xff]  ;;  %vm3564_vm7 = vmmov 0   ;;  %vm2135_vm8 = vcmask 1041408  }
  0x1e   : > { %686 = vmatpush1.msra.mxu1 %v512_v11  ;;  %580 = vmatprep.subr.mxu0 %v2897_v13  ;;  %v499_v21 = vld [vmem:[%s491_s20 + $0x10] sm:$0xff]  ;;  %501 = vst.msk [vmem:[#allocation2 + $0x2] sm:$0xff] %vm492_vm1, %v497_v19  ;;  %502 = vst.msk [vmem:[#allocation2 + $0xa] sm:$0xff] %vm492_vm1, %v498_v20  ;;  %v500_v22 = vld [vmem:[%s491_s20 + $0x18] sm:$0xf]  ;;  %vm2131_vm9 = vcmask 80896  }
  0x1f   : > { %687 = vmatprep.subr.mxu1 %v511_v14  ;;  %581 = vmatpush1.msra.mxu0 %v2896_v15  ;;  %503 = vst.msk [vmem:[#allocation2 + $0x12] sm:$0xff] %vm492_vm1, %v499_v21  ;;  %v2922_v23 = vld [vmem:[%s4821_s1 + $0xb0] sm:$0xf]  ;;  %v2921_v27 = vld [vmem:[%s4821_s1 + $0xa8] sm:$0xff]  ;;  %v2920_v31 = vld [vmem:[%s4821_s1 + $0xa0] sm:$0xff]  ;;  %vm2209_vm10 = vcmask 651264  }
  0x20   : > { %614 = vmatprep.mubr.f32.mxu0 %v3563_v12  ;;  %688 = vmatpush1.msra.mxu1 %v510_v16  ;;  %505 = vst.msk [vmem:[#allocation2 + $0x1a] sm:$0xf] %vm504_vm2, %v500_v22  ;;  %v2936_v26 = vld [vmem:[%s4821_s1 + $0xf0] sm:$0xf]  ;;  %v2935_v28 = vld [vmem:[%s4821_s1 + $0xe8] sm:$0xff]  ;;  %v2934_v32 = vld [vmem:[%s4821_s1 + $0xe0] sm:$0xff] }
  0x21   : > { %721 = vmatprep.mubr.f32.mxu1 %v3563_v12  ;;  %2924 = vmatprep.subr.msk.mxu0 %vm543_vm0, %v2923_v17  ;;  %v2919_v33 = vld [vmem:[%s4821_s1 + $0x98] sm:$0xff]  ;;  %v2918_v37 = vld [vmem:[%s4821_s1 + $0x90] sm:$0xff]  ;;  %v2917_v39 = vld [vmem:[%s4821_s1 + $0x88] sm:$0xff]  ;;  %vm2223_vm11 = vcmask 654336   ;;  %vm2658_vm12 = vcmask 982016   ;;  %vm2820_vm13 = vcmask 73728  }
  0x22   : > { %2938 = vmatprep.subr.msk.mxu1 %vm543_vm0, %v2937_v18  ;;  %v2933_v34 = vld [vmem:[%s4821_s1 + $0xd8] sm:$0xff]  ;;  %v2932_v38 = vld [vmem:[%s4821_s1 + $0xd0] sm:$0xff]  ;;  %v2931_v40 = vld [vmem:[%s4821_s1 + $0xc8] sm:$0xff]  ;;  %s3501_s23 = scalar_lea.vmem %s2836_s21, 16  ;;  %s3565_s22 = smov [#allocation5]  }
  0x23   : > { %v2916_v43 = vld [vmem:[%s4821_s1 + $0x80] sm:$0xff]  ;;  %v2951_v45 = vld [vmem:[%s4821_s1 + $0x138] sm:$0xf]  ;;  %v2950_v48 = vld [vmem:[%s4821_s1 + $0x130] sm:$0xf]  ;;  %p3502_p11 = scmp.ne.s32.totalorder %s2836_s21, %s3501_s23  ;;  %s3505_s25 = sshll.u32 %s3565_s22, 4  ;;  %s3506_s25 = int_to_ptr.vmem [resolvable:$false] %s3505_s25 }
  0x24   : > { %v2930_v44 = vld [vmem:[%s4821_s1 + $0xc0] sm:$0xff]  ;;  %v2949_v49 = vld [vmem:[%s4821_s1 + $0x128] sm:$0xff]  ;;  %v2947_v53 = vld [vmem:[%s4821_s1 + $0x118] sm:$0xff]  ;;  %s3507_s20 = scalar_lea.vmem %s3506_s25, 32  ;;  %p3508_p0 = scmp.lt.s32.totalorder %s2836_s21, %s3506_s25 }
  0x25   : > { %v518_v24 = vld [vmem:[#allocation2 + $0x1] sm:$0xff]  ;;  %v519_v29 = vld [vmem:[#allocation2 + $0x9] sm:$0xff]  ;;  %v1215_v1 = vld [vmem:[%s4823_s3 + $0x78] sm:$0xff]  ;;  %p3503_p12 = pnand %p3502_p11, %p3684_p5  ;;  %p3509_p1 = scmp.lt.s32.totalorder %s3507_s20, %s3501_s23 }
  0x26   : > { %v506_v25 = vld [vmem:[#allocation2] sm:$0xff]  ;;  %2906 = vmatmul.mubr.msk.f32.vlgmr.msra.gmra.mxu0 %vm492_vm1, %v518_v24  ;;  %v507_v30 = vld [vmem:[#allocation2 + $0x8] sm:$0xff]  ;;  %v520_v35 = vld [vmem:[#allocation2 + $0x11] sm:$0xff] }
  0x27   : > { %2912 = vmatmul.mubr.msk.f32.vlgmr.msra.gmra.mxu1 %vm492_vm1, %v506_v25  ;;  %620 = vmatprep.mubr.f32.mxu0 %v3563_v12  ;;  %v508_v36 = vld [vmem:[#allocation2 + $0x10] sm:$0xff]  ;;  %v521_v41 = vld [vmem:[#allocation2 + $0x19] sm:$0xf]  ;;  %v746_v46 = vld [vmem:[#allocation2 + $0x2] sm:$0xff]  ;;  %p3504_p13 = pneg %p3503_p12  ;;  %p3510_p2 = por %p3509_p1, %p3508_p0 }
  0x28   : > { %727 = vmatprep.mubr.f32.mxu1 %v3563_v12  ;;  %2925 = vmatpush1.msk.msra.mxu0 %vm543_vm0, %v2922_v23  ;;  %v509_v42 = vld [vmem:[#allocation2 + $0x18] sm:$0xf]  ;;  %v874_v47 = vld [vmem:[#allocation2 + $0x3] sm:$0xff]  ;;  %v875_v51 = vld [vmem:[#allocation2 + $0xb] sm:$0xff] }
  0x29   : > { %2939 = vmatpush1.msk.msra.mxu1 %vm543_vm0, %v2936_v26  ;;  %803 = vmatprep.subr.mxu0 %v2921_v27  ;;  %v747_v50 = vld [vmem:[#allocation2 + $0xa] sm:$0xff]  ;;  %v2948_v52 = vld [vmem:[%s4821_s1 + $0x120] sm:$0xff]  ;;  %v748_v54 = vld [vmem:[#allocation2 + $0x12] sm:$0xff]  ;;  %p3511_p3 = pnand %p3510_p2, %p3504_p13 }
  0x2a   : > { %931 = vmatprep.subr.mxu1 %v2935_v28  ;;  %2907 = vmatmul.mubr.msk.f32.gmra.mxu0 %vm492_vm1, %v519_v29  ;;  %v876_v55 = vld [vmem:[#allocation2 + $0x13] sm:$0xff]  ;;  %v2945_v57 = vld [vmem:[%s4821_s1 + $0x108] sm:$0xff]  ;;  %v877_v59 = vld [vmem:[#allocation2 + $0x1b] sm:$0xf] }
  0x2b   : > { %2913 = vmatmul.mubr.msk.f32.gmra.mxu1 %vm492_vm1, %v507_v30  ;;  %626 = vmatprep.mubr.f32.mxu0 %v3563_v12  ;;  %v2946_v56 = vld [vmem:[%s4821_s1 + $0x110] sm:$0xff]  ;;  %v749_v58 = vld [vmem:[#allocation2 + $0x1a] sm:$0xf]  ;;  %v2944_v60 = vld [vmem:[%s4821_s1 + $0x100] sm:$0xff] }
  0x2c   : > { %733 = vmatprep.mubr.f32.mxu1 %v3563_v12  ;;  %804 = vmatpush1.msra.mxu0 %v2920_v31  ;;  %v1002_v61 = vld [vmem:[#allocation2 + $0x4] sm:$0xff]  ;;  %v1003_v62 = vld [vmem:[#allocation2 + $0xc] sm:$0xff]  ;;  %v1004_v63 = vld [vmem:[#allocation2 + $0x14] sm:$0xff] }
  0x2d   : > { %932 = vmatpush1.msra.mxu1 %v2934_v32  ;;  %805 = vmatprep.subr.mxu0 %v2919_v33  ;;  %v1005_v0 = vld [vmem:[#allocation2 + $0x1c] sm:$0xf]  ;;  %v1214_v2 = vld [vmem:[%s4823_s3 + $0x70] sm:$0xff]  ;;  %v1213_v3 = vld [vmem:[%s4823_s3 + $0x68] sm:$0xff] }
  0x2e   : > { %933 = vmatprep.subr.mxu1 %v2933_v34  ;;  %2908 = vmatmul.mubr.msk.f32.gmra.mxu0 %vm492_vm1, %v520_v35  ;;  %v1212_v4 = vld [vmem:[%s4823_s3 + $0x60] sm:$0xff]  ;;  %v1211_v5 = vld [vmem:[%s4823_s3 + $0x58] sm:$0xff]  ;;  %v1210_v6 = vld [vmem:[%s4823_s3 + $0x50] sm:$0xff] }
  0x2f   : > { %2914 = vmatmul.mubr.msk.f32.gmra.mxu1 %vm492_vm1, %v508_v36  ;;  %632 = vmatprep.mubr.f32.mxu0 %v3563_v12  ;;  %v1209_v7 = vld [vmem:[%s4823_s3 + $0x48] sm:$0xff]  ;;  %v1208_v8 = vld [vmem:[%s4823_s3 + $0x40] sm:$0xff]  ;;  %v1207_v9 = vld [vmem:[%s4823_s3 + $0x38] sm:$0xff] }
  0x30   : > { %739 = vmatprep.mubr.f32.mxu1 %v3563_v12  ;;  %806 = vmatpush1.msra.mxu0 %v2918_v37  ;;  %v1206_v10 = vld [vmem:[%s4823_s3 + $0x30] sm:$0xff]  ;;  %v1205_v11 = vld [vmem:[%s4823_s3 + $0x28] sm:$0xff]  ;;  %v1204_v13 = vld [vmem:[%s4823_s3 + $0x20] sm:$0xff] }
  0x31   : > { %934 = vmatpush1.msra.mxu1 %v2932_v38  ;;  %807 = vmatprep.subr.mxu0 %v2917_v39  ;;  %v1203_v14 = vld [vmem:[%s4823_s3 + $0x18] sm:$0xff]  ;;  %v1202_v15 = vld [vmem:[%s4823_s3 + $0x10] sm:$0xff]  ;;  %v1201_v16 = vld [vmem:[%s4823_s3 + $0x8] sm:$0xff] }
  0x32   : > { %935 = vmatprep.subr.mxu1 %v2931_v40  ;;  %2909 = vmatmul.mubr.msk.f32.gmra.mxu0 %vm492_vm1, %v521_v41  ;;  %v1200_v17 = vld [vmem:[%s4823_s3] sm:$0xff]  ;;  %v1219_v19 = vld [vmem:[%s4823_s3 + $0x98] sm:$0xff]  ;;  %v1218_v20 = vld [vmem:[%s4823_s3 + $0x90] sm:$0xff] }
  0x33   : > { %2915 = vmatmul.mubr.msk.f32.gmra.mxu1 %vm492_vm1, %v509_v42  ;;  %808 = vmatpush1.msra.mxu0 %v2916_v43  ;;  %v1220_v18 = vld [vmem:[%s4823_s3 + $0xa0] sm:$0xff]  ;;  %v1217_v21 = vld [vmem:[%s4823_s3 + $0x88] sm:$0xff]  ;;  %v1132_v43 = vlaneseq }
  0x34   : > { %841 = vmatprep.mubr.f32.mxu0 %v3563_v12  ;;  %936 = vmatpush1.msra.mxu1 %v2930_v44  ;;  %v1216_v22 = vld [vmem:[%s4823_s3 + $0x80] sm:$0xff] }
  0x35   : > { %969 = vmatprep.mubr.f32.mxu1 %v3563_v12  ;;  %2952 = vmatprep.subr.msk.mxu0 %vm543_vm0, %v2951_v45 }
  0x36   : > { %1234 = vmatprep.subr.mxu1 %v3563_v12  ;;  %2926 = vmatmul.mubr.msk.f32.vlgmr.msra.gmra.mxu0 %vm492_vm1, %v746_v46 }
  0x37   : > { %2940 = vmatmul.mubr.msk.f32.vlgmr.msra.gmra.mxu1 %vm492_vm1, %v874_v47  ;;  %847 = vmatprep.mubr.f32.mxu0 %v3563_v12  ;;  %v3966_v47 = vshrl.u32 %v1132_v43, 7 }
  0x38   : > { %975 = vmatprep.mubr.f32.mxu1 %v3563_v12  ;;  %2953 = vmatpush1.msk.msra.mxu0 %vm543_vm0, %v2950_v48 }
  0x39   : > { %1059 = vmatprep.subr.mxu0 %v2949_v49  ;;  %1235 = vmatpush1.msra.mxu1 %v1215_v1 }
  0x3a   : > { %2927 = vmatmul.mubr.msk.f32.gmra.mxu0 %vm492_vm1, %v747_v50  ;;  %1236 = vmatprep.subr.mxu1 %v3563_v12 }
  0x3b   : > { %2941 = vmatmul.mubr.msk.f32.gmra.mxu1 %vm492_vm1, %v875_v51  ;;  %853 = vmatprep.mubr.f32.mxu0 %v3563_v12 }
  0x3c   : > { %981 = vmatprep.mubr.f32.mxu1 %v3563_v12  ;;  %1060 = vmatpush1.msra.mxu0 %v2948_v52 }
  0x3d   : > { %1061 = vmatprep.subr.mxu0 %v2947_v53  ;;  %1237 = vmatpush1.msra.mxu1 %v1214_v2 }
  0x3e   : > { %2928 = vmatmul.mubr.msk.f32.gmra.mxu0 %vm492_vm1, %v748_v54  ;;  %1238 = vmatprep.subr.mxu1 %v3563_v12  ;;  %v1134_v54 = vsub.s32 0, %v3966_v47 }
  0x3f   : > { %2942 = vmatmul.mubr.msk.f32.gmra.mxu1 %vm492_vm1, %v876_v55  ;;  %859 = vmatprep.mubr.f32.mxu0 %v3563_v12 }
  0x40   : > { %987 = vmatprep.mubr.f32.mxu1 %v3563_v12  ;;  %1062 = vmatpush1.msra.mxu0 %v2946_v56  ;;  %v1130_v56 = vld [vmem:[%s4822_s2] sm:$0x3] }
  0x41   : > { %1063 = vmatprep.subr.mxu0 %v2945_v57  ;;  %1239 = vmatpush1.msra.mxu1 %v1213_v3  ;;  %v1135_v1 = vrot.slane %v1130_v56, %v1134_v54 }
  0x42   : > { %2929 = vmatmul.mubr.msk.f32.gmra.mxu0 %vm492_vm1, %v749_v58  ;;  %1240 = vmatprep.subr.mxu1 %v3563_v12 }
  0x43   : > { %2943 = vmatmul.mubr.msk.f32.gmra.mxu1 %vm492_vm1, %v877_v59  ;;  %1064 = vmatpush1.msra.mxu0 %v2944_v60  ;;  %v1138_v60 = vsub.s32 1, %v3966_v47 }
  0x44   : > { %1097 = vmatprep.mubr.f32.mxu0 %v3563_v12  ;;  %1241 = vmatpush1.msra.mxu1 %v1212_v4 }
  0x45   : > { %1242 = vmatprep.subr.mxu1 %v3563_v12 }
  0x46   : > { %2954 = vmatmul.mubr.msk.f32.vlgmr.msra.gmra.mxu0 %vm492_vm1, %v1002_v61  ;;  %1243 = vmatpush1.msra.mxu1 %v1211_v5 }
  0x47   : > { %1103 = vmatprep.mubr.f32.mxu0 %v3563_v12  ;;  %1244 = vmatprep.subr.mxu1 %v3563_v12 }
  0x48   : > { %1245 = vmatpush1.msra.mxu1 %v1210_v6 }
  0x49   : > { %1246 = vmatprep.subr.mxu1 %v3563_v12 }
  0x4a   : > { %2955 = vmatmul.mubr.msk.f32.gmra.mxu0 %vm492_vm1, %v1003_v62  ;;  %1247 = vmatpush1.msra.mxu1 %v1209_v7  ;;  %v1139_v7 = vrot.slane %v1130_v56, %v1138_v60 }
  0x4b   : > { %1109 = vmatprep.mubr.f32.mxu0 %v3563_v12  ;;  %1248 = vmatprep.subr.mxu1 %v3563_v12 }
  0x4c   : > { %1249 = vmatpush1.msra.mxu1 %v1208_v8 }
  0x4d   : > { %1250 = vmatprep.subr.mxu1 %v3563_v12 }
  0x4e   : > { %2956 = vmatmul.mubr.msk.f32.gmra.mxu0 %vm492_vm1, %v1004_v63  ;;  %1251 = vmatpush1.msra.mxu1 %v1207_v9 }
  0x4f   : > { %1115 = vmatprep.mubr.f32.mxu0 %v3563_v12  ;;  %1252 = vmatprep.subr.mxu1 %v3563_v12 }
  0x50   : > { %1253 = vmatpush1.msra.mxu1 %v1206_v10 }
  0x51   : > { %1254 = vmatprep.subr.mxu1 %v3563_v12 }
  0x52   : > { %2957 = vmatmul.mubr.msk.f32.gmra.mxu0 %vm492_vm1, %v1005_v0  ;;  %1255 = vmatpush1.msra.mxu1 %v1205_v11 }
  0x53   : > { %1256 = vmatprep.subr.mxu1 %v3563_v12 }
  0x54   : > { %1257 = vmatpush1.msra.mxu1 %v1204_v13 }
  0x55   : > { %1258 = vmatprep.subr.mxu1 %v3563_v12 }
  0x56   : > { %1259 = vmatpush1.msra.mxu1 %v1203_v14 }
  0x57   : > { %1260 = vmatprep.subr.mxu1 %v3563_v12 }
  0x58   : > { %1261 = vmatpush1.msra.mxu1 %v1202_v15 }
  0x59   : > { %1262 = vmatprep.subr.mxu1 %v3563_v12 }
  0x5a   : > { %1263 = vmatpush1.msra.mxu1 %v1201_v16 }
  0x5b   : > { %1264 = vmatprep.subr.mxu1 %v3563_v12 }
  0x5c   : > { %1265 = vmatpush1.msra.mxu1 %v1200_v17 }
  0x5d   : > { %1288 = vmatprep.subr.mxu1 %v3563_v12 }
  0x5e   : > { %1289 = vmatpush2.msra.mxu1 %v1220_v18 }
  0x5f   : > { %1290 = vmatprep.subr.mxu1 %v3563_v12 }
  0x60   : > { %1291 = vmatpush2.msra.mxu1 %v1219_v19 }
  0x61   : > { %1292 = vmatprep.subr.mxu1 %v3563_v12 }
  0x62   : > { %1293 = vmatpush2.msra.mxu1 %v1218_v20 }
  0x63   : > { %1294 = vmatprep.subr.mxu1 %v3563_v12 }
  0x64   : > { %1295 = vmatpush2.msra.mxu1 %v1217_v21 }
  0x65   : > { %1296 = vmatprep.subr.mxu1 %v3563_v12 }
  0x66   : > { %1297 = vmatpush2.msra.mxu1 %v1216_v22 }
  0xe6   : > { %v616_v23 = vpop.f32.mrf.mxu0 }
  0xe7   : > { %v723_v24 = vpop.f32.mrf.mxu1 }
  0xe8   : > { %v618_v25 = vpop.f32.mrf.mxu0  ;;  %v724_v49 = vadd.f32 %v723_v24, %v616_v23 }
  0xe9   : > { %v725_v26 = vpop.f32.mrf.mxu1 }
  0xea   : > { %v622_v27 = vpop.f32.mrf.mxu0  ;;  %v726_v52 = vadd.f32 %v725_v26, %v618_v25 }
  0xeb   : > { %v729_v28 = vpop.f32.mrf.mxu1 }
  0xec   : > { %v624_v29 = vpop.f32.mrf.mxu0  ;;  %v730_v57 = vadd.f32 %v729_v28, %v622_v27 }
  0xed   : > { %v731_v30 = vpop.f32.mrf.mxu1 }
  0xee   : > { %v628_v31 = vpop.f32.mrf.mxu0  ;;  %v732_v62 = vadd.f32 %v731_v30, %v624_v29 }
  0xef   : > { %v735_v32 = vpop.f32.mrf.mxu1 }
  0xf0   : > { %v630_v33 = vpop.f32.mrf.mxu0  ;;  %v736_v8 = vadd.f32 %v735_v32, %v628_v31 }
  0xf1   : > { %v737_v34 = vpop.f32.mrf.mxu1 }
  0xf2   : > { %v634_v35 = vpop.f32.mrf.mxu0  ;;  %v738_v9 = vadd.f32 %v737_v34, %v630_v33 }
  0xf3   : > { %v741_v36 = vpop.f32.mrf.mxu1 }
  0xf4   : > { %v636_v37 = vpop.f32.mrf.mxu0  ;;  %v742_v15 = vadd.f32 %v741_v36, %v634_v35 }
  0xf5   : > { %v743_v38 = vpop.f32.mrf.mxu1 }
  0xf6   : > { %v843_v39 = vpop.f32.mrf.mxu0  ;;  %v744_v24 = vadd.f32 %v743_v38, %v636_v37 }
  0xf7   : > { %v971_v40 = vpop.f32.mrf.mxu1  ;;  %v866_v53 = vadd.f32 %v843_v39, %v724_v49 }
  0xf8   : > { %v845_v41 = vpop.f32.mrf.mxu0 }
  0xf9   : > { %v973_v42 = vpop.f32.mrf.mxu1  ;;  %v867_v58 = vadd.f32 %v845_v41, %v726_v52  ;;  %v994_v63 = vadd.f32 %v971_v40, %v866_v53 }
  0xfa   : > { %v849_v44 = vpop.f32.mrf.mxu0 }
  0xfb   : > { %v977_v45 = vpop.f32.mrf.mxu1  ;;  %v868_v0 = vadd.f32 %v849_v44, %v730_v57  ;;  %v995_v3 = vadd.f32 %v973_v42, %v867_v58 }
  0xfc   : > { %v851_v46 = vpop.f32.mrf.mxu0 }
  0xfd   : > { %v979_v50 = vpop.f32.mrf.mxu1  ;;  %v869_v4 = vadd.f32 %v851_v46, %v732_v62  ;;  %v996_v11 = vadd.f32 %v977_v45, %v868_v0 }
  0xfe   : > { %v855_v48 = vpop.f32.mrf.mxu0 }
  0xff   : > { %v983_v59 = vpop.f32.mrf.mxu1  ;;  %v870_v16 = vadd.f32 %v855_v48, %v736_v8  ;;  %v997_v19 = vadd.f32 %v979_v50, %v869_v4 }
 0x100   : > { %v857_v51 = vpop.f32.mrf.mxu0 }
 0x101   : > { %v985_v5 = vpop.f32.mrf.mxu1  ;;  %v871_v17 = vadd.f32 %v857_v51, %v738_v9  ;;  %v998_v31 = vadd.f32 %v983_v59, %v870_v16 }
 0x102   : > { %v861_v55 = vpop.f32.mrf.mxu0 }
 0x103   : > { %v989_v20 = vpop.f32.mrf.mxu1  ;;  %v872_v25 = vadd.f32 %v861_v55, %v742_v15  ;;  %v999_v32 = vadd.f32 %v985_v5, %v871_v17 }
 0x104   : > { %v863_v61 = vpop.f32.mrf.mxu0 }
 0x105   : > { %v873_v33 = vadd.f32 %v863_v61, %v744_v24  ;;  %v991_v35 = vpop.f32.mrf.mxu1  ;;  %v1000_v41 = vadd.f32 %v989_v20, %v872_v25 }
 0x106   : > { %v1099_v2 = vpop.f32.mrf.mxu0 }
 0x107   : > { %v1122_v6 = vadd.f32 %v1099_v2, %v994_v63  ;;  %v1001_v45 = vadd.f32 %v991_v35, %v873_v33  ;;  %v1425_v33 = vld [vmem:[%s4825_s5 + $0x80] sm:$0xff]  ;;  %v1423_v35 = vld [vmem:[%s4825_s5 + $0x70] sm:$0xff] }
 0x108   : > { %v1101_v10 = vpop.f32.mrf.mxu0 }
 0x109   : > { %v1142_v13 = vadd.f32 %v1135_v1, %v1122_v6  ;;  %v1123_v14 = vadd.f32 %v1101_v10, %v995_v3 }
 0x10a   : > { %v1105_v18 = vpop.f32.mrf.mxu0 }
 0x10b   : > { %v1150_v21 = vsub.f32 0.0, %v1142_v13  ;;  %v1143_v22 = vadd.f32 %v1139_v7, %v1123_v14  ;;  %v1124_v23 = vadd.f32 %v1105_v18, %v996_v11 }
 0x10c   : > { %v1107_v26 = vpop.f32.mrf.mxu0 }
 0x10d   : > { %v1158_v27 = vmul.f32 1.442695, %v1150_v21  ;;  %v1151_v28 = vsub.f32 0.0, %v1143_v22  ;;  %v1144_v29 = vadd.f32 %v1135_v1, %v1124_v23  ;;  %v1125_v30 = vadd.f32 %v1107_v26, %v997_v19 }
 0x10e   : > { %v1111_v34 = vpop.f32.mrf.mxu0 }
 0x10f   : > { %3453 = vpow2.f32 %v1158_v27  ;;  %v1160_v36 = vmul.f32 1.442695, %v1151_v28  ;;  %v1152_v39 = vsub.f32 0.0, %v1144_v29  ;;  %v1145_v40 = vadd.f32 %v1139_v7, %v1125_v30  ;;  %v1198_v27 = vld [vmem:[%s4824_s4] sm:$0xff]  ;;  %v1430_v28 = vld [vmem:[%s4825_s5 + $0xa8] sm:$0xf] }
 0x110   : > { %v1126_v42 = vadd.f32 %v1111_v34, %v998_v31  ;;  %v1113_v43 = vpop.f32.mrf.mxu0  ;;  %3229 = vmatprep.mubr.msk.f32.mxu0 %vm492_vm1, %v1198_v27  ;;  %2991 = vmatprep.subr.msk.mxu1 %vm543_vm0, %v1430_v28  ;;  %v1429_v29 = vld [vmem:[%s4825_s5 + $0xa0] sm:$0xf]  ;;  %v1428_v30 = vld [vmem:[%s4825_s5 + $0x98] sm:$0xff]  ;;  %v1427_v31 = vld [vmem:[%s4825_s5 + $0x90] sm:$0xff] }
 0x111   : > { %3455 = vpow2.f32 %v1160_v36  ;;  %v1162_v37 = vmul.f32 1.442695, %v1152_v39  ;;  %v1153_v38 = vsub.f32 0.0, %v1145_v40  ;;  %v1127_v44 = vadd.f32 %v1113_v43, %v999_v32  ;;  %v1426_v32 = vld [vmem:[%s4825_s5 + $0x88] sm:$0xff]  ;;  %v1424_v34 = vld [vmem:[%s4825_s5 + $0x78] sm:$0xff]  ;;  %v1421_v39 = vld [vmem:[%s4825_s5 + $0x60] sm:$0xff] }
 0x112   : > { %v1146_v46 = vadd.f32 %v1135_v1, %v1126_v42  ;;  %v1117_v48 = vpop.f32.mrf.mxu0  ;;  %v1422_v36 = vld [vmem:[%s4825_s5 + $0x68] sm:$0xff]  ;;  %v1420_v40 = vld [vmem:[%s4825_s5 + $0x58] sm:$0xff] }
 0x113   : > { %3457 = vpow2.f32 %v1162_v37  ;;  %v1164_v49 = vmul.f32 1.442695, %v1153_v38  ;;  %v1147_v50 = vadd.f32 %v1139_v7, %v1127_v44  ;;  %v1128_v51 = vadd.f32 %v1117_v48, %v1000_v41  ;;  %v1419_v41 = vld [vmem:[%s4825_s5 + $0x50] sm:$0xff]  ;;  %v3014_v27 = vld [vmem:[%s4825_s5 + $0x1f8] sm:$0xff] }
 0x114   : > { %v1154_v52 = vsub.f32 0.0, %v1146_v46  ;;  %v1119_v53 = vpop.f32.mrf.mxu0 }
 0x115   : > { %3459 = vpow2.f32 %v1164_v49  ;;  %v1155_v55 = vsub.f32 0.0, %v1147_v50  ;;  %v1148_v56 = vadd.f32 %v1135_v1, %v1128_v51  ;;  %v1129_v57 = vadd.f32 %v1119_v53, %v1001_v45  ;;  %v1199_v49 = vld [vmem:[%s4824_s4 + $0x8] sm:$0x3f]  ;;  %v2986_v50 = vld [vmem:[%s4825_s5 + $0x158] sm:$0xf]  ;;  %v2983_v53 = vld [vmem:[%s4825_s5 + $0x140] sm:$0xff] }
 0x116   : > { %v1166_v58 = vmul.f32 1.442695, %v1154_v52  ;;  %v2985_v51 = vld [vmem:[%s4825_s5 + $0x150] sm:$0xf]  ;;  %v2984_v52 = vld [vmem:[%s4825_s5 + $0x148] sm:$0xff] }
 0x117   : > { %v1168_v59 = vmul.f32 1.442695, %v1155_v55  ;;  %v1156_v61 = vsub.f32 0.0, %v1148_v56  ;;  %v1149_v62 = vadd.f32 %v1139_v7, %v1129_v57  ;;  %v2982_v55 = vld [vmem:[%s4825_s5 + $0x138] sm:$0xff]  ;;  %v2981_v56 = vld [vmem:[%s4825_s5 + $0x130] sm:$0xff]  ;;  %v2980_v57 = vld [vmem:[%s4825_s5 + $0x128] sm:$0xff] }
 0x118   : > { %3461 = vpow2.f32 %v1166_v58  ;;  %v2979_v58 = vld [vmem:[%s4825_s5 + $0x120] sm:$0xff] }
 0x119   : > { %3463 = vpow2.f32 %v1168_v59  ;;  %v1170_v63 = vmul.f32 1.442695, %v1156_v61  ;;  %v1157_v0 = vsub.f32 0.0, %v1149_v62  ;;  %v2978_v59 = vld [vmem:[%s4825_s5 + $0x118] sm:$0xff]  ;;  %v2977_v61 = vld [vmem:[%s4825_s5 + $0x110] sm:$0xff]  ;;  %v2976_v62 = vld [vmem:[%s4825_s5 + $0x108] sm:$0xff] }
 0x11b   : > { %3465 = vpow2.f32 %v1170_v63  ;;  %v1172_v2 = vmul.f32 1.442695, %v1157_v0  ;;  %v2975_v63 = vld [vmem:[%s4825_s5 + $0x100] sm:$0xff]  ;;  %v2974_v0 = vld [vmem:[%s4825_s5 + $0xf8] sm:$0xff] }
 0x11c   : > { %v3454_v3 = vpop.eup %3453 }
 0x11d   : > { %3467 = vpow2.f32 %v1172_v2  ;;  %v1174_v5 = vadd.f32 1.0, %v3454_v3  ;;  %v1418_v2 = vld [vmem:[%s4825_s5 + $0x48] sm:$0xff]  ;;  %v2973_v3 = vld [vmem:[%s4825_s5 + $0xf0] sm:$0xff] }
 0x11e   : > { %v3456_v4 = vpop.eup %3455 }
 0x11f   : > { %v1175_v6 = vadd.f32 1.0, %v3456_v4  ;;  %v1417_v4 = vld [vmem:[%s4825_s5 + $0x40] sm:$0xff] }
 0x120   : > { %v3458_v8 = vpop.eup %3457 }
 0x121   : > { %3469 = vrcp.f32 %v1175_v6  ;;  %v1176_v1 = vadd.f32 1.0, %v3458_v8  ;;  %v1416_v6 = vld [vmem:[%s4825_s5 + $0x38] sm:$0xff]  ;;  %v2971_v8 = vld [vmem:[%s4825_s5 + $0xe0] sm:$0xff] }
 0x122   : > { %v3460_v9 = vpop.eup %3459  ;;  %3471 = vrcp.f32 %v1174_v5  ;;  %v2972_v5 = vld [vmem:[%s4825_s5 + $0xe8] sm:$0xff] }
 0x123   : > { %v1177_v10 = vadd.f32 1.0, %v3460_v9  ;;  %v1415_v9 = vld [vmem:[%s4825_s5 + $0x30] sm:$0xff] }
 0x125   : > { %v3462_v11 = vpop.eup %3461  ;;  %3473 = vrcp.f32 %v1177_v10  ;;  %v1414_v10 = vld [vmem:[%s4825_s5 + $0x28] sm:$0xff] }
 0x126   : > { %v3464_v7 = vpop.eup %3463  ;;  %3475 = vrcp.f32 %v1176_v1  ;;  %v1178_v13 = vadd.f32 1.0, %v3462_v11  ;;  %v2970_v1 = vld [vmem:[%s4825_s5 + $0xd8] sm:$0xff]  ;;  %v2969_v11 = vld [vmem:[%s4825_s5 + $0xd0] sm:$0xff] }
 0x127   : > { %v1179_v14 = vadd.f32 1.0, %v3464_v7  ;;  %v1413_v7 = vld [vmem:[%s4825_s5 + $0x20] sm:$0xff] }
 0x128   : > { %v3466_v15 = vpop.eup %3465 }
 0x129   : > { %3477 = vrcp.f32 %v1179_v14  ;;  %v1180_v17 = vadd.f32 1.0, %v3466_v15  ;;  %v1412_v14 = vld [vmem:[%s4825_s5 + $0x18] sm:$0xff]  ;;  %v2967_v15 = vld [vmem:[%s4825_s5 + $0xc0] sm:$0xff] }
 0x12a   : > { %v3468_v16 = vpop.eup %3467  ;;  %3479 = vrcp.f32 %v1178_v13  ;;  %v2968_v13 = vld [vmem:[%s4825_s5 + $0xc8] sm:$0xff] }
 0x12b   : > { %v1181_v18 = vadd.f32 1.0, %v3468_v16  ;;  %v1411_v16 = vld [vmem:[%s4825_s5 + $0x10] sm:$0xff] }
 0x12d   : > { %3481 = vrcp.f32 %v1181_v18  ;;  %v1410_v18 = vld [vmem:[%s4825_s5 + $0x8] sm:$0xff] }
 0x12e   : > { %v3470_v19 = vpop.eup %3469  ;;  %3483 = vrcp.f32 %v1180_v17  ;;  %v2966_v17 = vld [vmem:[%s4825_s5 + $0xb8] sm:$0xff] }
 0x12f   : > { %v3472_v20 = vpop.eup %3471  ;;  %2958 = vmatprep.mubr.msk.f32.mxu1 %vm1221_vm3, %v3470_v19  ;;  %v2965_v19 = vld [vmem:[%s4825_s5 + $0xb0] sm:$0xff] }
 0x130   : > { %1299 = vmatmul.mubr.f32.vlgmr.msra.gmra.mxu1 %v3472_v20  ;;  %v1409_v20 = vld [vmem:[%s4825_s5] sm:$0xff] }
 0x131   : > { %2992 = vmatpush1.msk.msra.mxu1 %vm543_vm0, %v1429_v29 }
 0x132   : > { %v3474_v21 = vpop.eup %3473  ;;  %1569 = vmatprep.subr.mxu1 %v1428_v30  ;;  %v3040_v30 = vld [vmem:[%s4825_s5 + $0x2a8] sm:$0xff] }
 0x133   : > { %v3476_v22 = vpop.eup %3475  ;;  %2959 = vmatprep.mubr.msk.f32.mxu1 %vm1221_vm3, %v3474_v21  ;;  %1570 = vmatpush1.msra.mxu1 %v1427_v31  ;;  %v3016_v21 = vld [vmem:[%s4825_s5 + $0x208] sm:$0xf]  ;;  %v3013_v31 = vld [vmem:[%s4825_s5 + $0x1f0] sm:$0xff] }
 0x134   : > { %1304 = vmatmul.mubr.f32.gmra.mxu1 %v3476_v22  ;;  %1571 = vmatprep.subr.mxu1 %v1426_v32  ;;  %v3042_v22 = vld [vmem:[%s4825_s5 + $0x2b8] sm:$0xf]  ;;  %v3039_v32 = vld [vmem:[%s4825_s5 + $0x2a0] sm:$0xff] }
 0x135   : > { %1572 = vmatpush1.msra.mxu1 %v1425_v33  ;;  %v3012_v33 = vld [vmem:[%s4825_s5 + $0x1e8] sm:$0xff] }
 0x136   : > { %v3478_v23 = vpop.eup %3477  ;;  %1573 = vmatprep.subr.mxu1 %v1424_v34  ;;  %v3038_v34 = vld [vmem:[%s4825_s5 + $0x298] sm:$0xff] }
 0x137   : > { %v3480_v24 = vpop.eup %3479  ;;  %2960 = vmatprep.mubr.msk.f32.mxu1 %vm1221_vm3, %v3478_v23  ;;  %1574 = vmatpush1.msra.mxu1 %v1423_v35  ;;  %v3011_v35 = vld [vmem:[%s4825_s5 + $0x1e0] sm:$0xff] }
 0x138   : > { %1309 = vmatmul.mubr.f32.gmra.mxu1 %v3480_v24  ;;  %1575 = vmatprep.subr.mxu1 %v1422_v36  ;;  %v3037_v36 = vld [vmem:[%s4825_s5 + $0x290] sm:$0xff] }
 0x139   : > { %1576 = vmatpush1.msra.mxu1 %v1421_v39  ;;  %v3010_v39 = vld [vmem:[%s4825_s5 + $0x1d8] sm:$0xff] }
 0x13a   : > { %v3482_v25 = vpop.eup %3481  ;;  %1577 = vmatprep.subr.mxu1 %v1420_v40 }
 0x13b   : > { %v3484_v26 = vpop.eup %3483  ;;  %2961 = vmatprep.mubr.msk.f32.mxu1 %vm1221_vm3, %v3482_v25  ;;  %1578 = vmatpush1.msra.mxu1 %v1419_v41  ;;  %v3015_v25 = vld [vmem:[%s4825_s5 + $0x200] sm:$0xf] }
 0x13c   : > { %1314 = vmatmul.mubr.f32.gmra.mxu1 %v3484_v26  ;;  %1579 = vmatprep.subr.mxu1 %v1418_v2  ;;  %v3041_v26 = vld [vmem:[%s4825_s5 + $0x2b0] sm:$0xf] }
 0x13d   : > { %1621 = vmatprep.mubr.f32.mxu1 %v3563_v12  ;;  %1580 = vmatpush1.msra.mxu1 %v1417_v4  ;;  %v3025_v2 = vld [vmem:[%s4825_s5 + $0x230] sm:$0xff]  ;;  %v3024_v4 = vld [vmem:[%s4825_s5 + $0x228] sm:$0xff] }
 0x13e   : > { %1581 = vmatprep.subr.mxu1 %v1416_v6  ;;  %v3023_v6 = vld [vmem:[%s4825_s5 + $0x220] sm:$0xff] }
 0x13f   : > { %1582 = vmatpush1.msra.mxu1 %v1415_v9  ;;  %v3022_v9 = vld [vmem:[%s4825_s5 + $0x218] sm:$0xff] }
 0x140   : > { %1583 = vmatprep.subr.mxu1 %v1414_v10  ;;  %v3021_v10 = vld [vmem:[%s4825_s5 + $0x210] sm:$0xff] }
 0x141   : > { %1584 = vmatpush1.msra.mxu1 %v1413_v7 }
 0x142   : > { %1585 = vmatprep.subr.mxu1 %v1412_v14  ;;  %v3067_v14 = vld [vmem:[%s4825_s5 + $0x360] sm:$0xf] }
 0x143   : > { %1586 = vmatpush1.msra.mxu1 %v1411_v16  ;;  %v3065_v16 = vld [vmem:[%s4825_s5 + $0x350] sm:$0xff] }
 0x144   : > { %1587 = vmatprep.subr.mxu1 %v1410_v18 }
 0x145   : > { %1588 = vmatpush1.msra.mxu1 %v1409_v20 }
 0x146   : > { %3043 = vmatprep.subr.msk.mxu1 %vm543_vm0, %v3042_v22  ;;  %v3061_v22 = vld [vmem:[%s4825_s5 + $0x330] sm:$0xff] }
 0x1f0   : > { %v1300_v42 = vpop.f32.mrf.mxu1 }
 0x1f2   : > { %v1302_v43 = vpop.f32.mrf.mxu1 }
 0x1f3   : > { %v3009_v43 = vld [vmem:[%s4825_s5 + $0x1d0] sm:$0xff] }
 0x1f4   : > { %v1305_v37 = vpop.f32.mrf.mxu1 }
 0x1f6   : > { %v1307_v38 = vpop.f32.mrf.mxu1 }
 0x1f7   : > { %v3008_v38 = vld [vmem:[%s4825_s5 + $0x1c8] sm:$0xff] }
 0x1f8   : > { %v1310_v44 = vpop.f32.mrf.mxu1 }
 0x1fa   : > { %v1312_v45 = vpop.f32.mrf.mxu1 }
 0x1fb   : > { %v3007_v45 = vld [vmem:[%s4825_s5 + $0x1c0] sm:$0xff] }
 0x1fc   : > { %v1315_v46 = vpop.f32.mrf.mxu1 }
 0x1fd   : > { %3221 = vmatprep.subr.msk.mxu0 %vm543_vm0, %v1315_v46 }
 0x1fe   : > { %v1317_v48 = vpop.f32.mrf.mxu1  ;;  %3222 = vmatpush3.msk.msra.mxu0 %vm543_vm0, %v1315_v46  ;;  %v3033_v46 = vld [vmem:[%s4825_s5 + $0x270] sm:$0xff] }
 0x1ff   : > { %3223 = vmatprep.subr.mxu0 %v1310_v44  ;;  %v3006_v48 = vld [vmem:[%s4825_s5 + $0x1b8] sm:$0xff] }
 0x200   : > { %3224 = vmatpush3.msra.mxu0 %v1310_v44  ;;  %v3034_v44 = vld [vmem:[%s4825_s5 + $0x278] sm:$0xff] }
 0x201   : > { %3225 = vmatprep.subr.mxu0 %v1305_v37 }
 0x202   : > { %3226 = vmatpush3.msra.mxu0 %v1305_v37  ;;  %v3035_v37 = vld [vmem:[%s4825_s5 + $0x280] sm:$0xff] }
 0x203   : > { %3227 = vmatprep.subr.mxu0 %v1300_v42 }
 0x204   : > { %3228 = vmatpush3.msra.mxu0 %v1300_v42  ;;  %v3036_v42 = vld [vmem:[%s4825_s5 + $0x288] sm:$0xff] }
 0x205   : > { %3230 = vmatmul.mubr.msk.f32.vlgmr.msra.gmra.mxu0 %vm492_vm1, %v1199_v49  ;;  %2987 = vmatprep.subr.msk.mxu0 %vm543_vm0, %v2986_v50  ;;  %v3032_v49 = vld [vmem:[%s4825_s5 + $0x268] sm:$0xff]  ;;  %v3005_v50 = vld [vmem:[%s4825_s5 + $0x1b0] sm:$0xff] }
 0x206   : > { %2988 = vmatpush1.msk.msra.mxu0 %vm543_vm0, %v2985_v51  ;;  %1532 = vmatprep.mubr.f32.mxu0 %v3563_v12  ;;  %v3031_v51 = vld [vmem:[%s4825_s5 + $0x260] sm:$0xff] }
 0x207   : > { %1480 = vmatprep.subr.mxu0 %v2984_v52  ;;  %v3004_v52 = vld [vmem:[%s4825_s5 + $0x1a8] sm:$0xff] }
 0x208   : > { %1481 = vmatpush1.msra.mxu0 %v2983_v53  ;;  %v3030_v53 = vld [vmem:[%s4825_s5 + $0x258] sm:$0xff] }
 0x209   : > { %1482 = vmatprep.subr.mxu0 %v2982_v55  ;;  %v3003_v55 = vld [vmem:[%s4825_s5 + $0x1a0] sm:$0xff] }
 0x20a   : > { %1483 = vmatpush1.msra.mxu0 %v2981_v56  ;;  %v3029_v56 = vld [vmem:[%s4825_s5 + $0x250] sm:$0xff] }
 0x20b   : > { %1484 = vmatprep.subr.mxu0 %v2980_v57  ;;  %v3002_v57 = vld [vmem:[%s4825_s5 + $0x198] sm:$0xff] }
 0x20c   : > { %1485 = vmatpush1.msra.mxu0 %v2979_v58  ;;  %v3028_v58 = vld [vmem:[%s4825_s5 + $0x248] sm:$0xff] }
 0x20d   : > { %1486 = vmatprep.subr.mxu0 %v2978_v59  ;;  %v3001_v59 = vld [vmem:[%s4825_s5 + $0x190] sm:$0xff] }
 0x20e   : > { %1487 = vmatpush1.msra.mxu0 %v2977_v61  ;;  %v3027_v61 = vld [vmem:[%s4825_s5 + $0x240] sm:$0xff] }
 0x20f   : > { %1488 = vmatprep.subr.mxu0 %v2976_v62  ;;  %v3000_v62 = vld [vmem:[%s4825_s5 + $0x188] sm:$0xff] }
 0x210   : > { %1489 = vmatpush1.msra.mxu0 %v2975_v63  ;;  %v3026_v63 = vld [vmem:[%s4825_s5 + $0x238] sm:$0xff] }
 0x211   : > { %1490 = vmatprep.subr.mxu0 %v2974_v0  ;;  %v2999_v0 = vld [vmem:[%s4825_s5 + $0x180] sm:$0xff] }
 0x212   : > { %1491 = vmatpush1.msra.mxu0 %v2973_v3  ;;  %v2998_v3 = vld [vmem:[%s4825_s5 + $0x178] sm:$0xff] }
 0x213   : > { %1492 = vmatprep.subr.mxu0 %v2972_v5  ;;  %v2997_v5 = vld [vmem:[%s4825_s5 + $0x170] sm:$0xff] }
 0x214   : > { %1493 = vmatpush1.msra.mxu0 %v2971_v8  ;;  %v2996_v8 = vld [vmem:[%s4825_s5 + $0x168] sm:$0xff] }
 0x215   : > { %1494 = vmatprep.subr.mxu0 %v2970_v1  ;;  %v2995_v1 = vld [vmem:[%s4825_s5 + $0x160] sm:$0xff] }
 0x216   : > { %1495 = vmatpush1.msra.mxu0 %v2969_v11  ;;  %v3068_v11 = vld [vmem:[%s4825_s5 + $0x368] sm:$0xf] }
 0x217   : > { %1496 = vmatprep.subr.mxu0 %v2968_v13 }
 0x218   : > { %1497 = vmatpush1.msra.mxu0 %v2967_v15  ;;  %v3066_v15 = vld [vmem:[%s4825_s5 + $0x358] sm:$0xff] }
 0x219   : > { %1498 = vmatprep.subr.mxu0 %v2966_v17  ;;  %v3064_v17 = vld [vmem:[%s4825_s5 + $0x348] sm:$0xff] }
 0x21a   : > { %1499 = vmatpush1.msra.mxu0 %v2965_v19  ;;  %v3063_v19 = vld [vmem:[%s4825_s5 + $0x340] sm:$0xff] }
 0x21b   : > { %3017 = vmatprep.subr.msk.mxu0 %vm543_vm0, %v3016_v21  ;;  %v3062_v21 = vld [vmem:[%s4825_s5 + $0x338] sm:$0xff] }
 0x2c5   : > { %v3231_v23 = vpop.f32.mrf.mxu0 }
 0x2c6   : > { %1406 = vst.msk [vmem:[#allocation3 + $0x8] sm:$0x3f] %vm1405_vm4, %v3231_v23  ;;  %v3060_v23 = vld [vmem:[%s4825_s5 + $0x328] sm:$0xff] }
 0x2c7   : > { %v1394_v24 = vpop.f32.mrf.mxu0 }
 0x2c8   : > { %1404 = vst.msk [vmem:[#allocation3] sm:$0xff] %vm1403_vm5, %v1394_v24  ;;  %v3059_v24 = vld [vmem:[%s4825_s5 + $0x320] sm:$0xff] }
 0x2cd   : > { %v1432_v40 = vld [vmem:[#allocation3 + $0x9] sm:$0x3]  ;;  %v1753_v18 = vld [vmem:[#allocation3 + $0xb] sm:$0x3] }
 0x2ce   : > { %v1408_v41 = vld [vmem:[#allocation3 + $0x8] sm:$0x3]  ;;  %v1635_v20 = vld [vmem:[#allocation3 + $0xa] sm:$0x3] }
 0x2cf   : > { %v1431_v28 = vld [vmem:[#allocation3 + $0x1] sm:$0xff] }
 0x2d0   : > { %v1407_v29 = vld [vmem:[#allocation3] sm:$0xff]  ;;  %2989 = vmatmul.mubr.msk.f32.vlgmr.msra.gmra.mxu0 %vm1403_vm5, %v1431_v28 }
 0x2d1   : > { %2993 = vmatmul.mubr.msk.f32.vlgmr.msra.gmra.mxu1 %vm1403_vm5, %v1407_v29  ;;  %3018 = vmatpush1.msk.msra.mxu0 %vm543_vm0, %v3015_v25  ;;  %v1634_v7 = vld [vmem:[#allocation3 + $0x2] sm:$0xff]  ;;  %v3058_v25 = vld [vmem:[%s4825_s5 + $0x318] sm:$0xff] }
 0x2d2   : > { %3044 = vmatpush1.msk.msra.mxu1 %vm543_vm0, %v3041_v26  ;;  %1683 = vmatprep.subr.mxu0 %v3014_v27  ;;  %v1752_v13 = vld [vmem:[#allocation3 + $0x3] sm:$0xff]  ;;  %v3057_v26 = vld [vmem:[%s4825_s5 + $0x310] sm:$0xff]  ;;  %v3054_v29 = vld [vmem:[%s4825_s5 + $0x2f8] sm:$0xff] }
 0x2d3   : > { %1801 = vmatprep.subr.mxu1 %v3040_v30  ;;  %1684 = vmatpush1.msra.mxu0 %v3013_v31  ;;  %v3056_v27 = vld [vmem:[%s4825_s5 + $0x308] sm:$0xff]  ;;  %v3055_v28 = vld [vmem:[%s4825_s5 + $0x300] sm:$0xff]  ;;  %v3053_v30 = vld [vmem:[%s4825_s5 + $0x2f0] sm:$0xff] }
 0x2d4   : > { %1802 = vmatpush1.msra.mxu1 %v3039_v32  ;;  %1538 = vmatprep.mubr.f32.mxu0 %v3563_v12  ;;  %v3052_v31 = vld [vmem:[%s4825_s5 + $0x2e8] sm:$0xff]  ;;  %v3051_v32 = vld [vmem:[%s4825_s5 + $0x2e0] sm:$0xff] }
 0x2d5   : > { %1627 = vmatprep.mubr.f32.mxu1 %v3563_v12  ;;  %1685 = vmatprep.subr.mxu0 %v3012_v33  ;;  %v3050_v33 = vld [vmem:[%s4825_s5 + $0x2d8] sm:$0xff] }
 0x2d6   : > { %1803 = vmatprep.subr.mxu1 %v3038_v34  ;;  %2990 = vmatmul.mubr.msk.f32.gmra.mxu0 %vm1403_vm5, %v1432_v40  ;;  %v3049_v34 = vld [vmem:[%s4825_s5 + $0x2d0] sm:$0xff]  ;;  %v1871_v40 = vld [vmem:[#allocation3 + $0xc] sm:$0x3] }
 0x2d7   : > { %2994 = vmatmul.mubr.msk.f32.gmra.mxu1 %vm1403_vm5, %v1408_v41  ;;  %1686 = vmatpush1.msra.mxu0 %v3011_v35  ;;  %v3048_v35 = vld [vmem:[%s4825_s5 + $0x2c8] sm:$0xff]  ;;  %v2044_v41 = vld [vmem:[%s4827_s7 + $0x78] sm:$0xff] }
 0x2d8   : > { %1804 = vmatpush1.msra.mxu1 %v3037_v36  ;;  %1687 = vmatprep.subr.mxu0 %v3010_v39  ;;  %v3047_v36 = vld [vmem:[%s4825_s5 + $0x2c0] sm:$0xff] }
 0x2d9   : > { %1805 = vmatprep.subr.mxu1 %v3036_v42  ;;  %1688 = vmatpush1.msra.mxu0 %v3009_v43  ;;  %v1870_v39 = vld [vmem:[#allocation3 + $0x4] sm:$0xff]  ;;  %v2043_v42 = vld [vmem:[%s4827_s7 + $0x70] sm:$0xff] }
 0x2da   : > { %1806 = vmatpush1.msra.mxu1 %v3035_v37  ;;  %1689 = vmatprep.subr.mxu0 %v3008_v38  ;;  %v2042_v43 = vld [vmem:[%s4827_s7 + $0x68] sm:$0xff]  ;;  %v2041_v37 = vld [vmem:[%s4827_s7 + $0x60] sm:$0xff]  ;;  %v2040_v38 = vld [vmem:[%s4827_s7 + $0x58] sm:$0xff] }
 0x2db   : > { %1807 = vmatprep.subr.mxu1 %v3034_v44  ;;  %1690 = vmatpush1.msra.mxu0 %v3007_v45  ;;  %v2039_v44 = vld [vmem:[%s4827_s7 + $0x50] sm:$0xff]  ;;  %v2038_v45 = vld [vmem:[%s4827_s7 + $0x48] sm:$0xff] }
 0x2dc   : > { %1808 = vmatpush1.msra.mxu1 %v3033_v46  ;;  %1691 = vmatprep.subr.mxu0 %v3006_v48  ;;  %v2037_v46 = vld [vmem:[%s4827_s7 + $0x40] sm:$0xff]  ;;  %v2036_v48 = vld [vmem:[%s4827_s7 + $0x38] sm:$0xff] }
 0x2dd   : > { %1809 = vmatprep.subr.mxu1 %v3032_v49  ;;  %1692 = vmatpush1.msra.mxu0 %v3005_v50  ;;  %v2035_v49 = vld [vmem:[%s4827_s7 + $0x30] sm:$0xff]  ;;  %v2034_v50 = vld [vmem:[%s4827_s7 + $0x28] sm:$0xff] }
 0x2de   : > { %1810 = vmatpush1.msra.mxu1 %v3031_v51  ;;  %1693 = vmatprep.subr.mxu0 %v3004_v52  ;;  %v2033_v51 = vld [vmem:[%s4827_s7 + $0x20] sm:$0xff]  ;;  %v2032_v52 = vld [vmem:[%s4827_s7 + $0x18] sm:$0xff] }
 0x2df   : > { %1811 = vmatprep.subr.mxu1 %v3030_v53  ;;  %1694 = vmatpush1.msra.mxu0 %v3003_v55  ;;  %v2031_v53 = vld [vmem:[%s4827_s7 + $0x10] sm:$0xff]  ;;  %v2030_v55 = vld [vmem:[%s4827_s7 + $0x8] sm:$0xff] }
 0x2e0   : > { %1812 = vmatpush1.msra.mxu1 %v3029_v56  ;;  %1695 = vmatprep.subr.mxu0 %v3002_v57  ;;  %v2029_v56 = vld [vmem:[%s4827_s7] sm:$0xff]  ;;  %v2048_v57 = vld [vmem:[%s4827_s7 + $0x98] sm:$0xff] }
 0x2e1   : > { %1813 = vmatprep.subr.mxu1 %v3028_v58  ;;  %1696 = vmatpush1.msra.mxu0 %v3001_v59  ;;  %v2047_v58 = vld [vmem:[%s4827_s7 + $0x90] sm:$0xff]  ;;  %v2046_v59 = vld [vmem:[%s4827_s7 + $0x88] sm:$0xff] }
 0x2e2   : > { %1814 = vmatpush1.msra.mxu1 %v3027_v61  ;;  %1697 = vmatprep.subr.mxu0 %v3000_v62  ;;  %v2045_v61 = vld [vmem:[%s4827_s7 + $0x80] sm:$0xff] }
 0x2e3   : > { %1815 = vmatprep.subr.mxu1 %v3026_v63  ;;  %1698 = vmatpush1.msra.mxu0 %v2999_v0 }
 0x2e4   : > { %1816 = vmatpush1.msra.mxu1 %v3025_v2  ;;  %1699 = vmatprep.subr.mxu0 %v2998_v3 }
 0x2e5   : > { %1817 = vmatprep.subr.mxu1 %v3024_v4  ;;  %1700 = vmatpush1.msra.mxu0 %v2997_v5 }
 0x2e6   : > { %1818 = vmatpush1.msra.mxu1 %v3023_v6  ;;  %1701 = vmatprep.subr.mxu0 %v2996_v8 }
 0x2e7   : > { %1819 = vmatprep.subr.mxu1 %v3022_v9  ;;  %1702 = vmatpush1.msra.mxu0 %v2995_v1 }
 0x2e8   : > { %1735 = vmatprep.mubr.f32.mxu0 %v3563_v12  ;;  %1820 = vmatpush1.msra.mxu1 %v3021_v10 }
 0x2e9   : > { %1853 = vmatprep.mubr.f32.mxu1 %v3563_v12  ;;  %3019 = vmatmul.mubr.msk.f32.vlgmr.msra.gmra.mxu0 %vm1403_vm5, %v1634_v7 }
 0x2ea   : > { %3045 = vmatmul.mubr.msk.f32.vlgmr.msra.gmra.mxu1 %vm1403_vm5, %v1752_v13  ;;  %3069 = vmatprep.subr.msk.mxu0 %vm543_vm0, %v3068_v11 }
 0x2eb   : > { %1741 = vmatprep.mubr.f32.mxu0 %v3563_v12  ;;  %3070 = vmatpush1.msk.msra.mxu0 %vm543_vm0, %v3067_v14 }
 0x2ec   : > { %1859 = vmatprep.mubr.f32.mxu1 %v3563_v12  ;;  %1919 = vmatprep.subr.mxu0 %v3066_v15  ;;  %v1988_v15 = vld [vmem:[%s4826_s6] sm:$0x3] }
 0x2ed   : > { %2056 = vmatprep.subr.mxu1 %v3563_v12  ;;  %1920 = vmatpush1.msra.mxu0 %v3065_v16 }
 0x2ee   : > { %3046 = vmatmul.mubr.msk.f32.gmra.mxu1 %vm1403_vm5, %v1753_v18  ;;  %3020 = vmatmul.mubr.msk.f32.gmra.mxu0 %vm1403_vm5, %v1635_v20 }
 0x2ef   : > { %1921 = vmatprep.subr.mxu0 %v3064_v17  ;;  %1971 = vmatprep.mubr.f32.mxu0 %v3563_v12 }
 0x2f0   : > { %1922 = vmatpush1.msra.mxu0 %v3063_v19  ;;  %2057 = vmatpush1.msra.mxu1 %v2044_v41 }
 0x2f1   : > { %1923 = vmatprep.subr.mxu0 %v3062_v21  ;;  %2058 = vmatprep.subr.mxu1 %v3563_v12 }
 0x2f2   : > { %1924 = vmatpush1.msra.mxu0 %v3061_v22  ;;  %2059 = vmatpush1.msra.mxu1 %v2043_v42  ;;  %v1993_v22 = vrot.slane %v1988_v15, %v1134_v54 }
 0x2f3   : > { %1925 = vmatprep.subr.mxu0 %v3060_v23  ;;  %2060 = vmatprep.subr.mxu1 %v3563_v12 }
 0x2f4   : > { %1926 = vmatpush1.msra.mxu0 %v3059_v24  ;;  %2061 = vmatpush1.msra.mxu1 %v2042_v43 }
 0x2f5   : > { %1927 = vmatprep.subr.mxu0 %v3058_v25  ;;  %2062 = vmatprep.subr.mxu1 %v3563_v12 }
 0x2f6   : > { %1928 = vmatpush1.msra.mxu0 %v3057_v26  ;;  %2063 = vmatpush1.msra.mxu1 %v2041_v37 }
 0x2f7   : > { %1929 = vmatprep.subr.mxu0 %v3056_v27  ;;  %2064 = vmatprep.subr.mxu1 %v3563_v12 }
 0x2f8   : > { %1930 = vmatpush1.msra.mxu0 %v3055_v28  ;;  %2065 = vmatpush1.msra.mxu1 %v2040_v38  ;;  %v1997_v28 = vrot.slane %v1988_v15, %v1138_v60  ;;  %v2217_v15 = vld [vmem:[%s4829_s9 + $0x20] sm:$0xff] }
 0x2f9   : > { %1931 = vmatprep.subr.mxu0 %v3054_v29  ;;  %2066 = vmatprep.subr.mxu1 %v3563_v12 }
 0x2fa   : > { %1932 = vmatpush1.msra.mxu0 %v3053_v30  ;;  %2067 = vmatpush1.msra.mxu1 %v2039_v44 }
 0x2fb   : > { %1933 = vmatprep.subr.mxu0 %v3052_v31  ;;  %2068 = vmatprep.subr.mxu1 %v3563_v12 }
 0x2fc   : > { %1934 = vmatpush1.msra.mxu0 %v3051_v32  ;;  %2069 = vmatpush1.msra.mxu1 %v2038_v45 }
 0x2fd   : > { %1935 = vmatprep.subr.mxu0 %v3050_v33  ;;  %2070 = vmatprep.subr.mxu1 %v3563_v12 }
 0x2fe   : > { %1936 = vmatpush1.msra.mxu0 %v3049_v34  ;;  %2071 = vmatpush1.msra.mxu1 %v2037_v46 }
 0x2ff   : > { %1937 = vmatprep.subr.mxu0 %v3048_v35  ;;  %2072 = vmatprep.subr.mxu1 %v3563_v12 }
 0x300   : > { %1938 = vmatpush1.msra.mxu0 %v3047_v36  ;;  %2073 = vmatpush1.msra.mxu1 %v2036_v48 }
 0x301   : > { %3071 = vmatmul.mubr.msk.f32.vlgmr.msra.gmra.mxu0 %vm1403_vm5, %v1870_v39  ;;  %3232 = vmatprep.subr.mxu0 %v3563_v12 }
 0x302   : > { %1977 = vmatprep.mubr.f32.mxu0 %v3563_v12  ;;  %2074 = vmatprep.subr.mxu1 %v3563_v12 }
 0x303   : > { %2075 = vmatpush1.msra.mxu1 %v2035_v49 }
 0x304   : > { %2076 = vmatprep.subr.mxu1 %v3563_v12 }
 0x305   : > { %3072 = vmatmul.mubr.msk.f32.gmra.mxu0 %vm1403_vm5, %v1871_v40  ;;  %2077 = vmatpush1.msra.mxu1 %v2034_v50 }
 0x306   : > { %2078 = vmatprep.subr.mxu1 %v3563_v12  ;;  %3236 = vmatprep.mubr.msk.f32.mxu0 %vm3564_vm7, %v3563_v12 }
 0x307   : > { %2079 = vmatpush1.msra.mxu1 %v2033_v51 }
 0x308   : > { %2080 = vmatprep.subr.mxu1 %v3563_v12 }
 0x309   : > { %2081 = vmatpush1.msra.mxu1 %v2032_v52 }
 0x30a   : > { %2082 = vmatprep.subr.mxu1 %v3563_v12 }
 0x30b   : > { %2083 = vmatpush1.msra.mxu1 %v2031_v53 }
 0x30c   : > { %2084 = vmatprep.subr.mxu1 %v3563_v12 }
 0x30d   : > { %2085 = vmatpush1.msra.mxu1 %v2030_v55 }
 0x30e   : > { %2086 = vmatprep.subr.mxu1 %v3563_v12 }
 0x30f   : > { %2087 = vmatpush1.msra.mxu1 %v2029_v56 }
 0x310   : > { %2112 = vmatprep.subr.mxu1 %v3563_v12 }
 0x311   : > { %2113 = vmatpush2.msra.mxu1 %v2048_v57 }
 0x312   : > { %2114 = vmatprep.subr.mxu1 %v3563_v12 }
 0x313   : > { %2115 = vmatpush2.msra.mxu1 %v2047_v58 }
 0x314   : > { %2116 = vmatprep.subr.mxu1 %v3563_v12 }
 0x315   : > { %2117 = vmatpush2.msra.mxu1 %v2046_v59 }
 0x316   : > { %2118 = vmatprep.subr.mxu1 %v3563_v12 }
 0x317   : > { %2119 = vmatpush2.msra.mxu1 %v2045_v61 }
 0x318   : > { %3285 = vmatprep.subr.mxu1 %v3563_v12 }
 0x390   : > { %v1534_v62 = vpop.f32.mrf.mxu0 }
 0x391   : > { %v1623_v0 = vpop.f32.mrf.mxu1 }
 0x392   : > { %v1536_v63 = vpop.f32.mrf.mxu0  ;;  %v1624_v10 = vadd.f32 %v1623_v0, %v1534_v62  ;;  %v3098_v62 = vld [vmem:[%s4829_s9 + $0xe8] sm:$0xff]  ;;  %v3096_v0 = vld [vmem:[%s4829_s9 + $0xd8] sm:$0xff] }
 0x393   : > { %v1625_v3 = vpop.f32.mrf.mxu1 }
 0x394   : > { %v1626_v7 = vadd.f32 %v1625_v3, %v1536_v63  ;;  %v3097_v63 = vld [vmem:[%s4829_s9 + $0xe0] sm:$0xff]  ;;  %v3094_v3 = vld [vmem:[%s4829_s9 + $0xc8] sm:$0xff] }
 0x396   : > { %v1540_v2 = vpop.f32.mrf.mxu0 }
 0x397   : > { %v1629_v5 = vpop.f32.mrf.mxu1 }
 0x398   : > { %v1542_v4 = vpop.f32.mrf.mxu0  ;;  %v1630_v16 = vadd.f32 %v1629_v5, %v1540_v2  ;;  %v3095_v2 = vld [vmem:[%s4829_s9 + $0xd0] sm:$0xff] }
 0x399   : > { %v1631_v8 = vpop.f32.mrf.mxu1 }
 0x39a   : > { %v1632_v19 = vadd.f32 %v1631_v8, %v1542_v4  ;;  %v3093_v4 = vld [vmem:[%s4829_s9 + $0xc0] sm:$0xff] }
 0x3a9   : > { %v1737_v6 = vpop.f32.mrf.mxu0 }
 0x3aa   : > { %v1855_v1 = vpop.f32.mrf.mxu1  ;;  %v1748_v13 = vadd.f32 %v1737_v6, %v1624_v10  ;;  %v2222_v10 = vld [vmem:[%s4829_s9 + $0x48] sm:$0xff] }
 0x3ab   : > { %v1739_v9 = vpop.f32.mrf.mxu0 }
 0x3ac   : > { %v1857_v14 = vpop.f32.mrf.mxu1  ;;  %v1749_v17 = vadd.f32 %v1739_v9, %v1626_v7  ;;  %v1866_v20 = vadd.f32 %v1855_v1, %v1748_v13  ;;  %v2028_v9 = vld [vmem:[%s4828_s8] sm:$0x1f]  ;;  %v2220_v7 = vld [vmem:[%s4829_s9 + $0x38] sm:$0xff]  ;;  %v2219_v13 = vld [vmem:[%s4829_s9 + $0x30] sm:$0xff] }
 0x3ae   : > { %v1743_v11 = vpop.f32.mrf.mxu0  ;;  %v1861_v23 = vpop.f32.mrf.mxu1  ;;  %v1867_v25 = vadd.f32 %v1857_v14, %v1749_v17  ;;  %v2218_v14 = vld [vmem:[%s4829_s9 + $0x28] sm:$0xff]  ;;  %v3092_v17 = vld [vmem:[%s4829_s9 + $0xb8] sm:$0xff] }
 0x3af   : > { %v1750_v21 = vadd.f32 %v1743_v11, %v1630_v16  ;;  %v2221_v11 = vld [vmem:[%s4829_s9 + $0x40] sm:$0xff]  ;;  %v2216_v16 = vld [vmem:[%s4829_s9 + $0x18] sm:$0xff] }
 0x3b0   : > { %v1745_v18 = vpop.f32.mrf.mxu0  ;;  %v1863_v33 = vpop.f32.mrf.mxu1 }
 0x3b1   : > { %v1751_v26 = vadd.f32 %v1745_v18, %v1632_v19  ;;  %v1868_v30 = vadd.f32 %v1861_v23, %v1750_v21  ;;  %v2215_v18 = vld [vmem:[%s4829_s9 + $0x10] sm:$0xff]  ;;  %v3090_v21 = vld [vmem:[%s4829_s9 + $0xa8] sm:$0xff]  ;;  %v3089_v23 = vld [vmem:[%s4829_s9 + $0xa0] sm:$0xff] }
 0x3b2   : > { %v3091_v19 = vld [vmem:[%s4829_s9 + $0xb0] sm:$0xff] }
 0x3b3   : > { %v1869_v35 = vadd.f32 %v1863_v33, %v1751_v26  ;;  %v3087_v26 = vld [vmem:[%s4829_s9 + $0x98] sm:$0xff] }
 0x3b4   : > { %v3118_v33 = vld [vmem:[%s4829_s9 + $0x178] sm:$0xff] }
 0x3c1   : > { %v1973_v24 = vpop.f32.mrf.mxu0 }
 0x3c2   : > { %v1984_v27 = vadd.f32 %v1973_v24, %v1866_v20  ;;  %v2214_v20 = vld [vmem:[%s4829_s9 + $0x8] sm:$0xff] }
 0x3c3   : > { %v1975_v29 = vpop.f32.mrf.mxu0 }
 0x3c4   : > { %v2000_v31 = vadd.f32 %v1993_v22, %v1984_v27  ;;  %v1985_v32 = vadd.f32 %v1975_v29, %v1867_v25  ;;  %v3120_v27 = vld [vmem:[%s4829_s9 + $0x188] sm:$0xff] }
 0x3c5   : > { %v1979_v34 = vpop.f32.mrf.mxu0 }
 0x3c6   : > { %v2004_v36 = vsub.f32 0.0, %v2000_v31  ;;  %v2001_v39 = vadd.f32 %v1997_v28, %v1985_v32  ;;  %v1986_v40 = vadd.f32 %v1979_v34, %v1868_v30  ;;  %v3086_v30 = vld [vmem:[%s4829_s9 + $0x90] sm:$0xff]  ;;  %v3119_v31 = vld [vmem:[%s4829_s9 + $0x180] sm:$0xff]  ;;  %v3085_v32 = vld [vmem:[%s4829_s9 + $0x88] sm:$0xff] }
 0x3c7   : > { %v1981_v41 = vpop.f32.mrf.mxu0  ;;  %v3084_v34 = vld [vmem:[%s4829_s9 + $0x80] sm:$0xff] }
 0x3c8   : > { %v2008_v54 = vmul.f32 1.442695, %v2004_v36  ;;  %v2005_v42 = vsub.f32 0.0, %v2001_v39  ;;  %v2002_v43 = vadd.f32 %v1993_v22, %v1986_v40  ;;  %v1987_v37 = vadd.f32 %v1981_v41, %v1869_v35  ;;  %v2213_v22 = vld [vmem:[%s4829_s9] sm:$0xff]  ;;  %v3117_v35 = vld [vmem:[%s4829_s9 + $0x170] sm:$0xff]  ;;  %v3083_v36 = vld [vmem:[%s4829_s9 + $0x78] sm:$0xff] }
 0x3c9   : > { %v3116_v39 = vld [vmem:[%s4829_s9 + $0x168] sm:$0xff]  ;;  %v3082_v40 = vld [vmem:[%s4829_s9 + $0x70] sm:$0xff]  ;;  %v3115_v41 = vld [vmem:[%s4829_s9 + $0x160] sm:$0xff] }
 0x3ca   : > { %3485 = vpow2.f32 %v2008_v54  ;;  %v2010_v38 = vmul.f32 1.442695, %v2005_v42  ;;  %v2006_v44 = vsub.f32 0.0, %v2002_v43  ;;  %v2003_v47 = vadd.f32 %v1997_v28, %v1987_v37  ;;  %v3081_v54 = vld [vmem:[%s4829_s9 + $0x68] sm:$0xff]  ;;  %v3114_v42 = vld [vmem:[%s4829_s9 + $0x158] sm:$0xff]  ;;  %v3080_v43 = vld [vmem:[%s4829_s9 + $0x60] sm:$0xff] }
 0x3cb   : > { %v3113_v37 = vld [vmem:[%s4829_s9 + $0x150] sm:$0xff] }
 0x3cc   : > { %3487 = vpow2.f32 %v2010_v38  ;;  %v2012_v60 = vmul.f32 1.442695, %v2006_v44  ;;  %v2007_v45 = vsub.f32 0.0, %v2003_v47  ;;  %v3079_v38 = vld [vmem:[%s4829_s9 + $0x58] sm:$0xff]  ;;  %v3112_v44 = vld [vmem:[%s4829_s9 + $0x148] sm:$0xff]  ;;  %v3078_v47 = vld [vmem:[%s4829_s9 + $0x50] sm:$0xff] }
 0x3ce   : > { %3489 = vpow2.f32 %v2012_v60  ;;  %v2014_v46 = vmul.f32 1.442695, %v2007_v45  ;;  %v3111_v60 = vld [vmem:[%s4829_s9 + $0x140] sm:$0xff]  ;;  %v3109_v45 = vld [vmem:[%s4829_s9 + $0x138] sm:$0xff] }
 0x3d0   : > { %3491 = vpow2.f32 %v2014_v46 }
 0x3d7   : > { %v3486_v48 = vpop.eup %3485 }
 0x3d8   : > { %v2016_v50 = vadd.f32 1.0, %v3486_v48 }
 0x3d9   : > { %v3488_v49 = vpop.eup %3487 }
 0x3da   : > { %v2017_v51 = vadd.f32 1.0, %v3488_v49  ;;  %v3108_v49 = vld [vmem:[%s4829_s9 + $0x130] sm:$0xff] }
 0x3db   : > { %v3490_v52 = vpop.eup %3489 }
 0x3dc   : > { %3493 = vrcp.f32 %v2017_v51  ;;  %v2018_v55 = vadd.f32 1.0, %v3490_v52  ;;  %v3106_v51 = vld [vmem:[%s4829_s9 + $0x120] sm:$0xff]  ;;  %v3105_v52 = vld [vmem:[%s4829_s9 + $0x118] sm:$0xff] }
 0x3dd   : > { %v3492_v53 = vpop.eup %3491  ;;  %3495 = vrcp.f32 %v2016_v50  ;;  %v3107_v50 = vld [vmem:[%s4829_s9 + $0x128] sm:$0xff] }
 0x3de   : > { %v2019_v56 = vadd.f32 1.0, %v3492_v53  ;;  %v3104_v53 = vld [vmem:[%s4829_s9 + $0x110] sm:$0xff] }
 0x3e0   : > { %3497 = vrcp.f32 %v2019_v56  ;;  %v3102_v56 = vld [vmem:[%s4829_s9 + $0x100] sm:$0xff] }
 0x3e1   : > { %3499 = vrcp.f32 %v2018_v55  ;;  %v3103_v55 = vld [vmem:[%s4829_s9 + $0x108] sm:$0xff] }
 0x3e9   : > { %v3494_v57 = vpop.eup %3493 }
 0x3ea   : > { %v3496_v58 = vpop.eup %3495  ;;  %3073 = vmatprep.mubr.msk.f32.mxu1 %vm2049_vm6, %v3494_v57  ;;  %v3101_v57 = vld [vmem:[%s4829_s9 + $0xf8] sm:$0xff] }
 0x3eb   : > { %2121 = vmatmul.mubr.f32.vlgmr.msra.gmra.mxu1 %v3496_v58  ;;  %v3100_v58 = vld [vmem:[%s4829_s9 + $0xf0] sm:$0xff] }
 0x3ec   : > { %3286 = vmatpush3.msra.mxu1 %v3098_v62  ;;  %v2655_v62 = vld [vmem:[%s4831_s11 + $0x68] sm:$0xff] }
 0x3ed   : > { %v3498_v59 = vpop.eup %3497  ;;  %3287 = vmatprep.subr.mxu1 %v3563_v12 }
 0x3ee   : > { %v3500_v61 = vpop.eup %3499  ;;  %3074 = vmatprep.mubr.msk.f32.mxu1 %vm2049_vm6, %v3498_v59  ;;  %3288 = vmatpush3.msra.mxu1 %v3097_v63  ;;  %v2654_v63 = vld [vmem:[%s4831_s11 + $0x60] sm:$0xff] }
 0x3ef   : > { %2126 = vmatmul.mubr.f32.gmra.mxu1 %v3500_v61  ;;  %3289 = vmatprep.subr.mxu1 %v3563_v12  ;;  %v2656_v61 = vld [vmem:[%s4831_s11 + $0x70] sm:$0xff] }
 0x3f0   : > { %3305 = vmatprep.mubr.msk.f32.mxu1 %vm3564_vm7, %v3563_v12  ;;  %3290 = vmatpush3.msra.mxu1 %v3096_v0  ;;  %v2653_v0 = vld [vmem:[%s4831_s11 + $0x58] sm:$0xff] }
 0x3f1   : > { %3291 = vmatprep.subr.mxu1 %v3563_v12 }
 0x3f2   : > { %3292 = vmatpush3.msra.mxu1 %v3095_v2  ;;  %v2652_v2 = vld [vmem:[%s4831_s11 + $0x50] sm:$0xff] }
 0x3f3   : > { %3293 = vmatprep.subr.mxu1 %v3563_v12 }
 0x3f4   : > { %3294 = vmatpush3.msra.mxu1 %v3094_v3  ;;  %v2651_v3 = vld [vmem:[%s4831_s11 + $0x48] sm:$0xff] }
 0x3f5   : > { %3295 = vmatprep.subr.mxu1 %v3563_v12 }
 0x3f6   : > { %3296 = vmatpush3.msra.mxu1 %v3093_v4  ;;  %v2650_v4 = vld [vmem:[%s4831_s11 + $0x40] sm:$0xff] }
 0x3f7   : > { %3297 = vmatprep.subr.mxu1 %v3563_v12 }
 0x3f8   : > { %3298 = vmatpush3.msra.mxu1 %v3092_v17  ;;  %v2738_v17 = vld [vmem:[%s4833_s13 + $0x30] sm:$0xff] }
 0x3f9   : > { %3299 = vmatprep.subr.mxu1 %v3563_v12 }
 0x3fa   : > { %3300 = vmatpush3.msra.mxu1 %v3091_v19  ;;  %v2736_v19 = vld [vmem:[%s4833_s13 + $0x20] sm:$0xff] }
 0x3fb   : > { %3301 = vmatprep.subr.mxu1 %v3563_v12 }
 0x3fc   : > { %3302 = vmatpush3.msra.mxu1 %v3090_v21  ;;  %v2734_v21 = vld [vmem:[%s4833_s13 + $0x10] sm:$0xff] }
 0x3fd   : > { %3303 = vmatprep.subr.mxu1 %v3563_v12 }
 0x3fe   : > { %3304 = vmatpush3.msra.mxu1 %v3089_v23 }
 0x3ff   : > { %3331 = vmatprep.subr.mxu1 %v3563_v12 }
 0x4ab   : > { %v2122_v5 = vpop.f32.mrf.mxu1 }
 0x4ad   : > { %v2124_v6 = vpop.f32.mrf.mxu1 }
 0x4ae   : > { %v2648_v6 = vld [vmem:[%s4831_s11 + $0x30] sm:$0xff] }
 0x4af   : > { %v2127_v8 = vpop.f32.mrf.mxu1 }
 0x4b0   : > { %3233 = vmatpush3.msk.msra.mxu0 %vm2135_vm8, %v2127_v8  ;;  %v2647_v8 = vld [vmem:[%s4831_s11 + $0x28] sm:$0xff] }
 0x4b1   : > { %v2129_v1 = vpop.f32.mrf.mxu1  ;;  %3234 = vmatprep.subr.mxu0 %v3563_v12 }
 0x4b2   : > { %3235 = vmatpush3.msra.mxu0 %v2122_v5  ;;  %v2649_v5 = vld [vmem:[%s4831_s11 + $0x38] sm:$0xff] }
 0x4b3   : > { %3237 = vmatmul.mubr.msk.f32.vlgmr.msra.gmra.mxu0 %vm2131_vm9, %v2028_v9  ;;  %3239 = vmatprep.subr.mxu0 %v3563_v12  ;;  %v2646_v9 = vld [vmem:[%s4831_s11 + $0x20] sm:$0xff]  ;;  %v2645_v1 = vld [vmem:[%s4831_s11 + $0x18] sm:$0xff] }
 0x4b4   : > { %3240 = vmatpush3.msra.mxu0 %v2222_v10  ;;  %3259 = vmatprep.mubr.msk.f32.mxu0 %vm3564_vm7, %v3563_v12  ;;  %v2644_v10 = vld [vmem:[%s4831_s11 + $0x10] sm:$0xff] }
 0x4b5   : > { %3241 = vmatprep.subr.mxu0 %v3563_v12 }
 0x4b6   : > { %3242 = vmatpush3.msra.mxu0 %v2221_v11  ;;  %v2643_v11 = vld [vmem:[%s4831_s11 + $0x8] sm:$0xff] }
 0x4b7   : > { %3243 = vmatprep.subr.mxu0 %v3563_v12 }
 0x4b8   : > { %3244 = vmatpush3.msra.mxu0 %v2220_v7  ;;  %v2642_v7 = vld [vmem:[%s4831_s11] sm:$0xff] }
 0x4b9   : > { %3245 = vmatprep.subr.mxu0 %v3563_v12 }
 0x4ba   : > { %3246 = vmatpush3.msra.mxu0 %v2219_v13  ;;  %v2742_v13 = vld [vmem:[%s4833_s13 + $0x50] sm:$0xf] }
 0x4bb   : > { %3247 = vmatprep.subr.mxu0 %v3563_v12 }
 0x4bc   : > { %3248 = vmatpush3.msra.mxu0 %v2218_v14  ;;  %v2741_v14 = vld [vmem:[%s4833_s13 + $0x48] sm:$0xff] }
 0x4bd   : > { %3249 = vmatprep.subr.mxu0 %v3563_v12 }
 0x4be   : > { %3250 = vmatpush3.msra.mxu0 %v2217_v15  ;;  %v2740_v15 = vld [vmem:[%s4833_s13 + $0x40] sm:$0xff] }
 0x4bf   : > { %3251 = vmatprep.subr.mxu0 %v3563_v12 }
 0x4c0   : > { %3252 = vmatpush3.msra.mxu0 %v2216_v16  ;;  %v2739_v16 = vld [vmem:[%s4833_s13 + $0x38] sm:$0xff] }
 0x4c1   : > { %3253 = vmatprep.subr.mxu0 %v3563_v12 }
 0x4c2   : > { %3254 = vmatpush3.msra.mxu0 %v2215_v18  ;;  %v2737_v18 = vld [vmem:[%s4833_s13 + $0x28] sm:$0xff] }
 0x4c3   : > { %3255 = vmatprep.subr.mxu0 %v3563_v12 }
 0x4c4   : > { %3256 = vmatpush3.msra.mxu0 %v2214_v20  ;;  %v2735_v20 = vld [vmem:[%s4833_s13 + $0x18] sm:$0xff] }
 0x4c5   : > { %3257 = vmatprep.subr.mxu0 %v3563_v12 }
 0x4c6   : > { %3258 = vmatpush3.msra.mxu0 %v2213_v22 }
 0x4c7   : > { %3262 = vmatprep.subr.mxu0 %v3563_v12 }
 0x573   : > { %v2205_v24 = vpop.f32.mrf.mxu0 }
 0x574   : > { %2210 = vst.msk [vmem:[#allocation4] sm:$0x1f] %vm2209_vm10, %v2205_v24 }
 0x575   : > { %v3238_v25 = vpop.f32.mrf.mxu0 }
 0x57b   : > { %v2212_v28 = vld [vmem:[#allocation4] sm:$0x1]  ;;  %v2384_v29 = vld [vmem:[#allocation4 + $0x2] sm:$0x1]  ;;  %v2298_v46 = vld [vmem:[#allocation4 + $0x1] sm:$0x1] }
 0x57c   : > { %3260 = vmatmul.mubr.msk.f32.vlgmr.msra.gmra.mxu0 %vm2223_vm11, %v2212_v28  ;;  %3306 = vmatmul.mubr.msk.f32.vlgmr.msra.gmra.mxu1 %vm2223_vm11, %v2384_v29  ;;  %v2556_v48 = vld [vmem:[#allocation4 + $0x4] sm:$0x1]  ;;  %v2470_v59 = vld [vmem:[#allocation4 + $0x3] sm:$0x1] }
 0x57d   : > { %3263 = vmatpush3.msra.mxu0 %v3087_v26  ;;  %3332 = vmatpush3.msra.mxu1 %v3120_v27 }
 0x57e   : > { %3264 = vmatprep.subr.mxu0 %v3563_v12  ;;  %3333 = vmatprep.subr.mxu1 %v3563_v12 }
 0x57f   : > { %3265 = vmatpush3.msra.mxu0 %v3086_v30  ;;  %3334 = vmatpush3.msra.mxu1 %v3119_v31  ;;  %v2211_v30 = vld [vmem:[%s4830_s10] sm:$0x1] }
 0x580   : > { %3266 = vmatprep.subr.mxu0 %v3563_v12  ;;  %3335 = vmatprep.subr.mxu1 %v3563_v12 }
 0x581   : > { %3267 = vmatpush3.msra.mxu0 %v3085_v32  ;;  %3336 = vmatpush3.msra.mxu1 %v3118_v33 }
 0x582   : > { %3268 = vmatprep.subr.mxu0 %v3563_v12  ;;  %3337 = vmatprep.subr.mxu1 %v3563_v12 }
 0x583   : > { %3269 = vmatpush3.msra.mxu0 %v3084_v34  ;;  %3338 = vmatpush3.msra.mxu1 %v3117_v35 }
 0x584   : > { %3270 = vmatprep.subr.mxu0 %v3563_v12  ;;  %3339 = vmatprep.subr.mxu1 %v3563_v12 }
 0x585   : > { %3271 = vmatpush3.msra.mxu0 %v3083_v36  ;;  %3340 = vmatpush3.msra.mxu1 %v3116_v39 }
 0x586   : > { %3272 = vmatprep.subr.mxu0 %v3563_v12  ;;  %3341 = vmatprep.subr.mxu1 %v3563_v12 }
 0x587   : > { %3273 = vmatpush3.msra.mxu0 %v3082_v40  ;;  %3342 = vmatpush3.msra.mxu1 %v3115_v41  ;;  %v2733_v40 = vld [vmem:[%s4833_s13 + $0x8] sm:$0xff]  ;;  %v2732_v41 = vld [vmem:[%s4833_s13] sm:$0xff] }
 0x588   : > { %3274 = vmatprep.subr.mxu0 %v3563_v12  ;;  %3343 = vmatprep.subr.mxu1 %v3563_v12 }
 0x589   : > { %3275 = vmatpush3.msra.mxu0 %v3081_v54  ;;  %3344 = vmatpush3.msra.mxu1 %v3114_v42  ;;  %v2657_v54 = vld [vmem:[%s4832_s12] sm:$0x1] }
 0x58a   : > { %3276 = vmatprep.subr.mxu0 %v3563_v12  ;;  %3345 = vmatprep.subr.mxu1 %v3563_v12 }
 0x58b   : > { %3277 = vmatpush3.msra.mxu0 %v3080_v43  ;;  %3346 = vmatpush3.msra.mxu1 %v3113_v37 }
 0x58c   : > { %3278 = vmatprep.subr.mxu0 %v3563_v12  ;;  %3347 = vmatprep.subr.mxu1 %v3563_v12 }
 0x58d   : > { %3279 = vmatpush3.msra.mxu0 %v3079_v38  ;;  %3348 = vmatpush3.msra.mxu1 %v3112_v44 }
 0x58e   : > { %3280 = vmatprep.subr.mxu0 %v3563_v12  ;;  %3349 = vmatprep.subr.mxu1 %v3563_v12 }
 0x58f   : > { %3281 = vmatpush3.msra.mxu0 %v3078_v47  ;;  %3282 = vmatprep.mubr.msk.f32.mxu0 %vm3564_vm7, %v3563_v12 }
 0x590   : > { %3350 = vmatpush3.msra.mxu1 %v3111_v60  ;;  %3351 = vmatprep.mubr.msk.f32.mxu1 %vm3564_vm7, %v3563_v12 }
 0x591   : > { %3283 = vmatmul.mubr.msk.f32.vlgmr.msra.gmra.mxu0 %vm2223_vm11, %v2298_v46  ;;  %3308 = vmatprep.subr.mxu0 %v3563_v12 }
 0x592   : > { %3352 = vmatmul.mubr.msk.f32.vlgmr.msra.gmra.mxu1 %vm2223_vm11, %v2556_v48  ;;  %3309 = vmatpush3.msra.mxu0 %v3109_v45 }
 0x593   : > { %3310 = vmatprep.subr.mxu0 %v3563_v12  ;;  %3328 = vmatprep.mubr.msk.f32.mxu0 %vm3564_vm7, %v3563_v12 }
 0x594   : > { %3311 = vmatpush3.msra.mxu0 %v3108_v49  ;;  %3387 = vmatprep.subr.mxu1 %v3563_v12 }
 0x595   : > { %3312 = vmatprep.subr.mxu0 %v3563_v12  ;;  %3409 = vmatprep.mubr.msk.f32.mxu1 %vm3564_vm7, %v3563_v12 }
 0x596   : > { %3313 = vmatpush3.msra.mxu0 %v3107_v50  ;;  %3388 = vmatpush3.msk.msra.mxu1 %vm543_vm0, %v2742_v13 }
 0x597   : > { %3314 = vmatprep.subr.mxu0 %v3563_v12  ;;  %3389 = vmatprep.subr.mxu1 %v3563_v12 }
 0x598   : > { %3315 = vmatpush3.msra.mxu0 %v3106_v51  ;;  %3390 = vmatpush3.msra.mxu1 %v2741_v14 }
 0x599   : > { %3316 = vmatprep.subr.mxu0 %v3563_v12  ;;  %3391 = vmatprep.subr.mxu1 %v3563_v12 }
 0x59a   : > { %3317 = vmatpush3.msra.mxu0 %v3105_v52  ;;  %3392 = vmatpush3.msra.mxu1 %v2740_v15 }
 0x59b   : > { %3318 = vmatprep.subr.mxu0 %v3563_v12  ;;  %3393 = vmatprep.subr.mxu1 %v3563_v12 }
 0x59c   : > { %3319 = vmatpush3.msra.mxu0 %v3104_v53  ;;  %3394 = vmatpush3.msra.mxu1 %v2739_v16 }
 0x59d   : > { %3320 = vmatprep.subr.mxu0 %v3563_v12  ;;  %3395 = vmatprep.subr.mxu1 %v3563_v12 }
 0x59e   : > { %3321 = vmatpush3.msra.mxu0 %v3103_v55  ;;  %3396 = vmatpush3.msra.mxu1 %v2738_v17 }
 0x59f   : > { %3322 = vmatprep.subr.mxu0 %v3563_v12  ;;  %3397 = vmatprep.subr.mxu1 %v3563_v12 }
 0x5a0   : > { %3323 = vmatpush3.msra.mxu0 %v3102_v56  ;;  %3398 = vmatpush3.msra.mxu1 %v2737_v18 }
 0x5a1   : > { %3324 = vmatprep.subr.mxu0 %v3563_v12  ;;  %3399 = vmatprep.subr.mxu1 %v3563_v12 }
 0x5a2   : > { %3325 = vmatpush3.msra.mxu0 %v3101_v57  ;;  %3400 = vmatpush3.msra.mxu1 %v2736_v19 }
 0x5a3   : > { %3326 = vmatprep.subr.mxu0 %v3563_v12  ;;  %3401 = vmatprep.subr.mxu1 %v3563_v12 }
 0x5a4   : > { %3327 = vmatpush3.msra.mxu0 %v3100_v58  ;;  %3402 = vmatpush3.msra.mxu1 %v2735_v20 }
 0x5a5   : > { %3329 = vmatmul.mubr.msk.f32.vlgmr.msra.gmra.mxu0 %vm2223_vm11, %v2470_v59  ;;  %3354 = vmatprep.subr.mxu0 %v3563_v12 }
 0x5a6   : > { %3384 = vmatprep.mubr.msk.f32.mxu0 %vm3564_vm7, %v3563_v12  ;;  %3355 = vmatpush3.msra.mxu0 %v2656_v61 }
 0x5a7   : > { %3356 = vmatprep.subr.mxu0 %v3563_v12  ;;  %3403 = vmatprep.subr.mxu1 %v3563_v12 }
 0x5a8   : > { %3357 = vmatpush3.msra.mxu0 %v2655_v62  ;;  %3404 = vmatpush3.msra.mxu1 %v2734_v21 }
 0x5a9   : > { %3358 = vmatprep.subr.mxu0 %v3563_v12  ;;  %3405 = vmatprep.subr.mxu1 %v3563_v12 }
 0x5aa   : > { %3359 = vmatpush3.msra.mxu0 %v2654_v63  ;;  %3406 = vmatpush3.msra.mxu1 %v2733_v40 }
 0x5ab   : > { %3360 = vmatprep.subr.mxu0 %v3563_v12  ;;  %3407 = vmatprep.subr.mxu1 %v3563_v12 }
 0x5ac   : > { %3361 = vmatpush3.msra.mxu0 %v2653_v0  ;;  %3408 = vmatpush3.msra.mxu1 %v2732_v41 }
 0x5ad   : > { %3362 = vmatprep.subr.mxu0 %v3563_v12 }
 0x5ae   : > { %3363 = vmatpush3.msra.mxu0 %v2652_v2 }
 0x5af   : > { %3364 = vmatprep.subr.mxu0 %v3563_v12 }
 0x5b0   : > { %3365 = vmatpush3.msra.mxu0 %v2651_v3 }
 0x5b1   : > { %3366 = vmatprep.subr.mxu0 %v3563_v12 }
 0x5b2   : > { %3367 = vmatpush3.msra.mxu0 %v2650_v4 }
 0x5b3   : > { %3368 = vmatprep.subr.mxu0 %v3563_v12 }
 0x5b4   : > { %3369 = vmatpush3.msra.mxu0 %v2649_v5 }
 0x5b5   : > { %3370 = vmatprep.subr.mxu0 %v3563_v12 }
 0x5b6   : > { %3371 = vmatpush3.msra.mxu0 %v2648_v6 }
 0x5b7   : > { %3372 = vmatprep.subr.mxu0 %v3563_v12 }
 0x5b8   : > { %3373 = vmatpush3.msra.mxu0 %v2647_v8 }
 0x5b9   : > { %3374 = vmatprep.subr.mxu0 %v3563_v12 }
 0x5ba   : > { %3375 = vmatpush3.msra.mxu0 %v2646_v9 }
 0x5bb   : > { %3376 = vmatprep.subr.mxu0 %v3563_v12 }
 0x5bc   : > { %3377 = vmatpush3.msra.mxu0 %v2645_v1 }
 0x5bd   : > { %3378 = vmatprep.subr.mxu0 %v3563_v12 }
 0x5be   : > { %3379 = vmatpush3.msra.mxu0 %v2644_v10 }
 0x5bf   : > { %3380 = vmatprep.subr.mxu0 %v3563_v12 }
 0x5c0   : > { %3381 = vmatpush3.msra.mxu0 %v2643_v11 }
 0x5c1   : > { %3382 = vmatprep.subr.mxu0 %v3563_v12  ;;  %v2743_v12 = vld [vmem:[%s4834_s14] sm:$0x1] }
 0x5c2   : > { %3383 = vmatpush3.msra.mxu0 %v2642_v7 }
 0x63c   : > { %v2293_v22 = vpop.f32.mrf.mxu0  ;;  %v2465_v23 = vpop.f32.mrf.mxu1 }
 0x63d   : > { %v2297_v31 = vadd.f32 %v2293_v22, %v2211_v30 }
 0x63e   : > { %v3261_v24 = vpop.f32.mrf.mxu0  ;;  %v3307_v25 = vpop.f32.mrf.mxu1 }
 0x651   : > { %v2379_v26 = vpop.f32.mrf.mxu0 }
 0x652   : > { %v2637_v27 = vpop.f32.mrf.mxu1  ;;  %v2383_v32 = vadd.f32 %v2379_v26, %v2297_v31 }
 0x653   : > { %v3284_v28 = vpop.f32.mrf.mxu0 }
 0x654   : > { %v3353_v29 = vpop.f32.mrf.mxu1  ;;  %v2469_v33 = vadd.f32 %v2465_v23, %v2383_v32 }
 0x665   : > { %v2551_v34 = vpop.f32.mrf.mxu0 }
 0x666   : > { %v2555_v35 = vadd.f32 %v2551_v34, %v2469_v33 }
 0x667   : > { %v3330_v36 = vpop.f32.mrf.mxu0 }
 0x668   : > { %v2641_v39 = vadd.f32 %v2637_v27, %v2555_v35 }
 0x66a   : > { %3385 = vmatmul.mubr.msk.f32.vlgmr.msra.gmra.mxu0 %vm2658_vm12, %v2641_v39 }
 0x72a   : > { %v2728_v42 = vpop.f32.mrf.mxu0 }
 0x72b   : > { %v2729_v43 = vadd.f32 %v2728_v42, %v2657_v54 }
 0x72c   : > { %v3386_v37 = vpop.f32.mrf.mxu0 }
 0x72d   : > { %3410 = vmatmul.mubr.msk.f32.vlgmr.msra.gmra.mxu1 %vm1403_vm5, %v2729_v43 }
 0x7ed   : > { %v2816_v38 = vpop.f32.mrf.mxu1 }
 0x7ee   : > { %v2817_v44 = vadd.f32 %v2816_v38, %v2743_v12 }
 0x7ef   : > { %v3411_v47 = vpop.f32.mrf.mxu1 }
 0x7f0   : > { %2821 = vst.msk [vmem:[%s486_s18] sm:$0x1] %vm2820_vm13, %v2817_v44 }
 0x7f1   : > { %3514 = shalt.err (!%p3511_p3)
}
 0x7f2   : > { %s3515_s27 = scalar_lea.hbm %s4785_s16, 16  ;;  %s3519_s18 = scalar_lea.hbm %s4835_s15, 32 }
 0x7f3   : > { %p3516_p4 = scmp.ne.s32.totalorder %s4785_s16, %s3515_s27  ;;  %p3520_p9 = scmp.lt.s32.totalorder %s4785_s16, %s4835_s15 }
 0x7f4   : > { %p3521_p10 = scmp.lt.s32.totalorder %s3519_s18, %s3515_s27 }
 0x7f5   : > { %p3517_p7 = pnand %p3516_p4, %p3684_p5 }
 0x7f6   : > { %p3522_p11 = por %p3521_p10, %p3520_p9 }
 0x7f7   : > { %p3518_p8 = pneg %p3517_p7 }
 0x7f9   : > { %p3523_p12 = pnand %p3522_p11, %p3518_p8 }
 0x7fb   : > { %3526 = shalt.err (!%p3523_p12)
}
 0x7fc   : > { %3412 = dma.vmem_to_hbm [thread:$0]  (%p3684_p5), %s2836_s21, 16, %s4785_s16, %s2823_s17  }
 0x7fd PF: > { %s4850_s23 = sld [smem:[#allocation10_spill]] }
 0x7fe   : > { %s4851_s22 = sld [smem:[#allocation8_spill]] }
 0x803   : > { %p3418_p13 = scmp.ge.s32.totalorder %s4850_s23, 2 }
 0x804   : > { %s2847_s20 = sand.u32 1, %s4851_s22  }
 0x805   : > { %p3415_p0 = pnand %p3418_p13, %p3688_p6  ;;  %s2848_s26 = scalar_lea.sflag [#allocation6], %s2847_s20 }
 0x807   : > { %p3416_p1 = pneg %p3415_p0 }
 0x809   : > { %3544 = dma.done.wait (%p3416_p1), %s2848_s26, 16  }
 0x80a   : > { %3546 = vsyncadd (%p3416_p1), %s2848_s26, 4294967280  ;;  %s4853_s21 = sld [smem:[#allocation11_spill]]  ;;  %s4856_s18 = smov %s3553_s19 }
 0x80b   : > { %s4854_s27 = sld [smem:[#allocation9_spill]] }
 0x80c   : > { %s4855_s20 = sld [smem:[#allocation12_spill]] }
 0x810   : > { %p25_p2 = scmp.ge.s32.totalorder %s4853_s21, 4  }
 0x811   : > { %s4857_s19 = smov %s4854_s27 }
 0x812   :  { %27 = sbr.rel (!%p25_p2) target bundleno = 3 (0x3), region = 127 }
 0x817   :  { %2852 = vsyncpa [#allocation6], 1 }
 0x818   :  { %2854 = vsyncpa [#allocation6 + $0x1], 1 }

</bundles_post_ra>
